<compile_context>
chip_gen: v5e
topology: v5e:2x2
jax: 0.10.0
libtpu: 0.0.40
codegen_flags: <defaults>
</compile_context>

<pallas_src>
from functools import partial

import numpy as np

import jax
import jax.numpy as jnp
from jax.experimental import pallas as pl
from jax.experimental.pallas import tpu as pltpu

KH = 5  # 5x5 convs throughout


# ----------------------------------------------------------------------------
# Fused kernel: whole network, VMEM-resident, batch folded into M everywhere.
# ----------------------------------------------------------------------------
def _lenet_fused_kernel(lhs1_ref, t1_ref, b1_ref, r2_ref, s2_ref,
                        t3_ref, b3_ref, r4_ref, s4_ref,
                        t5_ref, b5_ref, gsel_ref, wf_ref, bf_ref, out_ref):
    f32 = jnp.float32

    def mm(a, b):
        return jnp.dot(a, b, preferred_element_type=f32)

    # ---- c1: 5x5 conv (BN folded) + ReLU --------------------------------
    # lhs1 is the host-built row-im2col (B*24, 5*W0*C0); one MXU matmul.
    y1 = jnp.maximum(mm(lhs1_ref[...], t1_ref[...]) + b1_ref[...], 0.0)

    # ---- s2: AvgPool2d(2,2) = row-pool matmul + col-pool matmul ----------
    # r2 also appends 4 zero rows so the c3 window slices stay in bounds.
    p1 = mm(mm(r2_ref[...], y1), s2_ref[...])            # (B*12+4, 12*C1)

    # ---- c3: 5x5 conv + ReLU: K-concat of the 5 row-shifted windows ------
    rows3 = r2_ref.shape[0] - (KH - 1)                    # B*12
    lhs3 = jnp.concatenate([p1[i:i + rows3, :] for i in range(KH)], axis=1)
    y3 = jnp.maximum(mm(lhs3, t3_ref[...]) + b3_ref[...], 0.0)   # (B*12, 8*C3)

    # ---- s4: AvgPool2d(2,2).  r4 also emits the all-zero rows that realize
    #      c5's row padding=2 (top/bottom pad and inter-sample gap).
    p3 = mm(mm(r4_ref[...], y3), s4_ref[...])             # (2+B*6+2, 4*Cin5)

    # ---- c5: 5x5 conv, padding=2 (cols folded into t5, rows via r4 zeros)
    #      + LeakyReLU(0.01) ----------------------------------------------
    rows5 = r4_ref.shape[0] - (KH - 1)                    # B*6
    lhs5 = jnp.concatenate([p3[i:i + rows5, :] for i in range(KH)], axis=1)
    z5 = mm(lhs5, t5_ref[...]) + b5_ref[...]              # (B*6, 4*C5)
    y5 = jnp.where(z5 > 0.0, z5, 0.01 * z5)

    # ---- flatten (torch NCHW order baked into wf) + f6 + fused heads -----
    # TODO(synk): nn.Dropout(0.5) training-mode masking not implemented
    # (eval mode == identity).
    nh = gsel_ref.shape[0]
    flat = jnp.concatenate([mm(gsel_ref[h], y5) for h in range(nh)], axis=1)
    out_ref[...] = mm(flat, wf_ref[...]) + bf_ref[...]    # (B, 128) one store


# ----------------------------------------------------------------------------
# Host-side (one-time) operand preparation
# ----------------------------------------------------------------------------
def _toeplitz_cat(w_hwio, w_in, pad):
    """K-concatenated row-Toeplitz weight (KH*W_in*Cin, W_out*Cout): column
    shifts and column padding are folded into the band."""
    w = np.asarray(w_hwio, dtype=np.float32)
    kh, kw, cin, cout = w.shape
    w_out = w_in + 2 * pad - kw + 1
    t = np.zeros((kh, w_in * cin, w_out * cout), np.float32)
    for i in range(kh):
        for ow in range(w_out):
            for j in range(kw):
                wc = ow + j - pad
                if 0 <= wc < w_in:
                    t[i, wc * cin:(wc + 1) * cin,
                      ow * cout:(ow + 1) * cout] = w[i, j]
    return t.reshape(kh * w_in * cin, w_out * cout)


def _row_pool_mat(batch, blk_in, n_pool, pad_top, pad_blk, pad_bot):
    """Batched 2x row pooling with built-in zero padding rows.

    Input rows are per-sample blocks of `blk_in` (pooled source rows are
    0..2*n_pool-1 of each block).  Output rows: `pad_top` zeros, then per
    sample `n_pool` pooled rows followed by `pad_blk` zeros, then `pad_bot`
    zeros."""
    blk_out = n_pool + pad_blk
    rows = pad_top + batch * blk_out + pad_bot
    r = np.zeros((rows, batch * blk_in), np.float32)
    for b in range(batch):
        for o in range(n_pool):
            r[pad_top + b * blk_out + o, b * blk_in + 2 * o] = 0.5
            r[pad_top + b * blk_out + o, b * blk_in + 2 * o + 1] = 0.5
    return r


def _col_pool_mat(w, c):
    """(w*c, (w//2)*c): 2x column pooling per channel (lanes are (w, c))."""
    s = np.zeros((w * c, (w // 2) * c), np.float32)
    for o in range(w // 2):
        for d in range(2):
            for ch in range(c):
                s[(2 * o + d) * c + ch, o * c + ch] = 0.5
    return s


def prepare_kernel_params(p, in_hw, batch):
    """Turn the (BN-folded) module parameters into the fused-kernel operands."""
    c1o = p["c1_w"].shape[3]
    c3o = p["c3_w"].shape[3]
    c5o = p["c5_w"].shape[3]
    h1 = in_hw - (KH - 1)       # after c1  (24)
    h2 = h1 // 2                # after s2  (12)
    h3 = h2 - (KH - 1)          # after c3  (8)
    h4 = h3 // 2                # after s4 / c5 (4)
    blk5 = h4 + 2               # per-sample row block after s4 (4 valid + 2 zero)

    def tile_bias(b, reps):
        return jnp.asarray(
            np.tile(np.asarray(b, np.float32).reshape(-1), reps)[None, :])

    # f6 weight rows are in torch NCHW-flatten order (c, h, w); reorder to the
    # kernel's (h, w, c) activation layout, then fold the obj/box/cls heads in
    # (exact: no nonlinearity between f6 and the heads, dropout eval identity).
    w6_hwc = (np.asarray(p["f6_w"], np.float32)
              .reshape(c5o, h4, h4, -1).transpose(1, 2, 0, 3)
              .reshape(h4 * h4 * c5o, -1))
    wh = np.concatenate([np.asarray(p["obj_w"], np.float32),
                         np.asarray(p["box_w"], np.float32),
                         np.asarray(p["cls_w"], np.float32)], axis=1)
    bh = np.concatenate([np.asarray(p["obj_b"], np.float32),
                         np.asarray(p["box_b"], np.float32),
                         np.asarray(p["cls_b"], np.float32)], axis=1)
    wf = w6_hwc @ wh                                     # (h4*h4*c5o, n_out)
    bf = np.asarray(p["f6_b"], np.float32) @ wh + bh     # (1, n_out)
    n_out = wf.shape[1]
    n_pad = ((n_out + 127) // 128) * 128                 # lane-dense output
    wf = np.pad(wf, ((0, 0), (0, n_pad - n_out)))
    bf = np.pad(bf, ((0, 0), (0, n_pad - n_out)))

    # Row selectors for the final flatten: gsel[h, b, :] picks y5 row b*blk5+h.
    gsel = np.zeros((h4, batch, batch * blk5), np.float32)
    for h in range(h4):
        for b in range(batch):
            gsel[h, b, b * blk5 + h] = 1.0

    return {
        "t1": jnp.asarray(_toeplitz_cat(p["c1_w"], in_hw, 0)),
        "b1": tile_bias(p["c1_b"], h1),
        "r2": jnp.asarray(_row_pool_mat(batch, h1, h2, 0, 0, KH - 1)),
        "s2": jnp.asarray(_col_pool_mat(h1, c1o)),
        "t3": jnp.asarray(_toeplitz_cat(p["c3_w"], h2, 0)),
        "b3": tile_bias(p["c3_b"], h3),
        "r4": jnp.asarray(_row_pool_mat(batch, h2, h4, 2, 2, 2)),
        "s4": jnp.asarray(_col_pool_mat(h3, c3o)),
        "t5": jnp.asarray(_toeplitz_cat(p["c5_w"], h4, 2)),
        "b5": tile_bias(p["c5_b"], h4),
        "gsel": jnp.asarray(gsel),
        "wf": jnp.asarray(wf),
        "bf": jnp.asarray(bf),
    }


# ----------------------------------------------------------------------------
# Forward wrapper (single pallas_call)
# ----------------------------------------------------------------------------
@partial(jax.jit, static_argnames=("num_classes",))
def lenet_forward(x_nchw, kp, num_classes):
    x = x_nchw.astype(jnp.float32)
    b, cin, h, w = x.shape
    oh1 = h - (KH - 1)
    # rows = image rows, lanes = (column, channel) interleaved (lane-dense).
    # Pre-materialize the row-im2col for c1 (layout plumbing, not compute).
    x2 = jnp.transpose(x, (0, 2, 3, 1)).reshape(b, h, w * cin)
    lhs1 = jnp.concatenate([x2[:, i:i + oh1, :] for i in range(KH)], axis=2)
    lhs1 = lhs1.reshape(b * oh1, KH * w * cin)

    args = (lhs1, kp["t1"], kp["b1"], kp["r2"], kp["s2"],
            kp["t3"], kp["b3"], kp["r4"], kp["s4"],
            kp["t5"], kp["b5"], kp["gsel"], kp["wf"], kp["bf"])

    out = pl.pallas_call(
        _lenet_fused_kernel,
        out_shape=jax.ShapeDtypeStruct((b, kp["wf"].shape[1]), jnp.float32),
        in_specs=[pl.BlockSpec(memory_space=pltpu.MemorySpace.VMEM)
                  for _ in range(len(args))],
        out_specs=pl.BlockSpec(memory_space=pltpu.MemorySpace.VMEM),
    )(*args)

    return out[:, 0:1], out[:, 1:5], out[:, 5:5 + num_classes]


# ----------------------------------------------------------------------------
# Deterministic parameter construction (BN folded into conv)
# ----------------------------------------------------------------------------
def make_params(key, inc, num_classes, feat_dim):
    keys = iter(jax.random.split(key, 32))

    def nrm(shape, scale):
        return scale * jax.random.normal(next(keys), shape, dtype=jnp.float32)

    def conv_block(cin, cout):
        w = nrm((5, 5, cin, cout), 0.2)
        b = nrm((cout,), 0.1)
        gamma = 1.0 + nrm((cout,), 0.1)
        beta = nrm((cout,), 0.1)
        mean = nrm((cout,), 0.1)
        var = jnp.abs(nrm((cout,), 0.1)) + 1.0
        s = gamma * jax.lax.rsqrt(var + 1e-5)
        return w * s, ((b - mean) * s + beta).reshape(1, cout)

    def linear(fin, fout):
        w = nrm((fin, fout), float(fin) ** -0.5)
        b = nrm((fout,), 0.05).reshape(1, fout)
        return w, b

    p = {}
    p["c1_w"], p["c1_b"] = conv_block(inc, 6)
    p["c3_w"], p["c3_b"] = conv_block(6, 16)
    p["c5_w"], p["c5_b"] = conv_block(16, 16)
    p["f6_w"], p["f6_b"] = linear(feat_dim, 84)
    p["obj_w"], p["obj_b"] = linear(84, 1)
    p["box_w"], p["box_b"] = linear(84, 4)
    p["cls_w"], p["cls_b"] = linear(84, num_classes)
    return p


# ----------------------------------------------------------------------------
# Pure-JAX reference (numerical sanity check)
# ----------------------------------------------------------------------------
def reference_forward(x_nchw, p):
    hi = jax.lax.Precision.HIGHEST
    x = jnp.transpose(x_nchw.astype(jnp.float32), (0, 2, 3, 1))

    def conv(x, w, b, padding=0, leaky=None):
        y = jax.lax.conv_general_dilated(
            x, w, (1, 1), [(padding, padding), (padding, padding)],
            dimension_numbers=("NHWC", "HWIO", "NHWC"), precision=hi)
        y = y + b.reshape(1, 1, 1, -1)
        return jnp.maximum(y, 0.0) if leaky is None else jnp.where(y > 0, y, leaky * y)

    def pool(x):
        n, h, w, c = x.shape
        return x.reshape(n, h // 2, 2, w // 2, 2, c).mean(axis=(2, 4))

    x = conv(x, p["c1_w"], p["c1_b"])
    x = pool(x)
    x = conv(x, p["c3_w"], p["c3_b"])
    x = pool(x)
    x = conv(x, p["c5_w"], p["c5_b"], padding=2, leaky=0.01)
    xf = jnp.transpose(x, (0, 3, 1, 2)).reshape(x.shape[0], -1)
    h = jnp.dot(xf, p["f6_w"], precision=hi) + p["f6_b"]
    return (jnp.dot(h, p["obj_w"], precision=hi) + p["obj_b"],
            jnp.dot(h, p["box_w"], precision=hi) + p["box_b"],
            jnp.dot(h, p["cls_w"], precision=hi) + p["cls_b"])


if __name__ == "__main__":
    inc, num_classes = 4, 10
    B, S = 2, 28                      # small synthetic input: (2, 4, 28, 28)
    feat_dim = 16 * (((S - 4) // 2 - 4) // 2) ** 2   # 16*4*4 = 256 (82944 @ 300x300)

    key = jax.random.PRNGKey(0)
    kx, kparam = jax.random.split(key)
    x = jax.random.normal(kx, (B, inc, S, S), dtype=jnp.float32)
    params = make_params(kparam, inc, num_classes, feat_dim)
    kernel_params = prepare_kernel_params(params, S, B)

    obj, box, cls = lenet_forward(x, kernel_params, num_classes=num_classes)
    jax.block_until_ready((obj, box, cls))

    assert obj.shape == (B, 1) and box.shape == (B, 4) and cls.shape == (B, num_classes)
    r_obj, r_box, r_cls = reference_forward(x, params)
    for got, ref in ((obj, r_obj), (box, r_box), (cls, r_cls)):
        err = float(jnp.max(jnp.abs(got - ref)))
        assert jnp.allclose(got, ref, rtol=5e-2, atol=5e-2), err

    print("KERNEL_OK")
</pallas_src>

<mosaic_0001>
module attributes {stable_mosaic.version = 11 : i64} {
  func.func @_lenet_fused_kernel(%arg0: memref<48x560xf32, #tpu.memory_space<vmem>>, %arg1: memref<560x144xf32, #tpu.memory_space<vmem>>, %arg2: memref<1x144xf32, #tpu.memory_space<vmem>>, %arg3: memref<28x48xf32, #tpu.memory_space<vmem>>, %arg4: memref<144x72xf32, #tpu.memory_space<vmem>>, %arg5: memref<360x128xf32, #tpu.memory_space<vmem>>, %arg6: memref<1x128xf32, #tpu.memory_space<vmem>>, %arg7: memref<16x24xf32, #tpu.memory_space<vmem>>, %arg8: memref<128x64xf32, #tpu.memory_space<vmem>>, %arg9: memref<320x64xf32, #tpu.memory_space<vmem>>, %arg10: memref<1x64xf32, #tpu.memory_space<vmem>>, %arg11: memref<4x2x12xf32, #tpu.memory_space<vmem>>, %arg12: memref<256x128xf32, #tpu.memory_space<vmem>>, %arg13: memref<1x128xf32, #tpu.memory_space<vmem>>, %arg14: memref<2x128xf32, #tpu.memory_space<vmem>>) attributes {dimension_semantics = [], scalar_prefetch = 0 : i64, scratch_operands = 0 : i64, tpu.core_type = #tpu.core_type<tc>} {
    %c0 = arith.constant 0 : index
    %c0_0 = arith.constant 0 : index
    %0 = vector.load %arg0[%c0, %c0_0] : memref<48x560xf32, #tpu.memory_space<vmem>>, vector<48x560xf32>
    %c0_1 = arith.constant 0 : index
    %c0_2 = arith.constant 0 : index
    %1 = vector.load %arg1[%c0_1, %c0_2] : memref<560x144xf32, #tpu.memory_space<vmem>>, vector<560x144xf32>
    %cst = arith.constant dense<0.000000e+00> : vector<48x144xf32>
    %2 = tpu.matmul %0, %1, %cst {dimension_numbers = #tpu.dot_dimension_numbers<[1], [0], [0], [1], [0, 0, 1, 1], [], []>} : vector<48x560xf32>, vector<560x144xf32>, vector<48x144xf32> -> vector<48x144xf32>
    %c0_3 = arith.constant 0 : index
    %c0_4 = arith.constant 0 : index
    %3 = vector.load %arg2[%c0_3, %c0_4] : memref<1x144xf32, #tpu.memory_space<vmem>>, vector<1x144xf32>
    %4 = vector.broadcast %3 : vector<1x144xf32> to vector<48x144xf32>
    %5 = arith.addf %2, %4 : vector<48x144xf32>
    %cst_5 = arith.constant 0.000000e+00 : f32
    %6 = vector.broadcast %cst_5 : f32 to vector<48x144xf32>
    %7 = arith.maximumf %5, %6 : vector<48x144xf32>
    %c0_6 = arith.constant 0 : index
    %c0_7 = arith.constant 0 : index
    %8 = vector.load %arg3[%c0_6, %c0_7] : memref<28x48xf32, #tpu.memory_space<vmem>>, vector<28x48xf32>
    %cst_8 = arith.constant dense<0.000000e+00> : vector<28x144xf32>
    %9 = tpu.matmul %8, %7, %cst_8 {dimension_numbers = #tpu.dot_dimension_numbers<[1], [0], [0], [1], [0, 0, 1, 1], [], []>} : vector<28x48xf32>, vector<48x144xf32>, vector<28x144xf32> -> vector<28x144xf32>
    %c0_9 = arith.constant 0 : index
    %c0_10 = arith.constant 0 : index
    %10 = vector.load %arg4[%c0_9, %c0_10] : memref<144x72xf32, #tpu.memory_space<vmem>>, vector<144x72xf32>
    %cst_11 = arith.constant dense<0.000000e+00> : vector<28x72xf32>
    %11 = tpu.matmul %9, %10, %cst_11 {dimension_numbers = #tpu.dot_dimension_numbers<[1], [0], [0], [1], [0, 0, 1, 1], [], []>} : vector<28x144xf32>, vector<144x72xf32>, vector<28x72xf32> -> vector<28x72xf32>
    %12 = vector.extract_strided_slice %11 {offsets = [0, 0], sizes = [24, 72], strides = [1, 1]} : vector<28x72xf32> to vector<24x72xf32>
    %13 = vector.extract_strided_slice %11 {offsets = [1, 0], sizes = [24, 72], strides = [1, 1]} : vector<28x72xf32> to vector<24x72xf32>
    %14 = vector.extract_strided_slice %11 {offsets = [2, 0], sizes = [24, 72], strides = [1, 1]} : vector<28x72xf32> to vector<24x72xf32>
    %15 = vector.extract_strided_slice %11 {offsets = [3, 0], sizes = [24, 72], strides = [1, 1]} : vector<28x72xf32> to vector<24x72xf32>
    %16 = vector.extract_strided_slice %11 {offsets = [4, 0], sizes = [24, 72], strides = [1, 1]} : vector<28x72xf32> to vector<24x72xf32>
    %17 = tpu.concatenate %12, %13, %14, %15, %16 in 1 : vector<24x72xf32>, vector<24x72xf32>, vector<24x72xf32>, vector<24x72xf32>, vector<24x72xf32> -> vector<24x360xf32>
    %c0_12 = arith.constant 0 : index
    %c0_13 = arith.constant 0 : index
    %18 = vector.load %arg5[%c0_12, %c0_13] : memref<360x128xf32, #tpu.memory_space<vmem>>, vector<360x128xf32>
    %cst_14 = arith.constant dense<0.000000e+00> : vector<24x128xf32>
    %19 = tpu.matmul %17, %18, %cst_14 {dimension_numbers = #tpu.dot_dimension_numbers<[1], [0], [0], [1], [0, 0, 1, 1], [], []>} : vector<24x360xf32>, vector<360x128xf32>, vector<24x128xf32> -> vector<24x128xf32>
    %c0_15 = arith.constant 0 : index
    %c0_16 = arith.constant 0 : index
    %20 = vector.load %arg6[%c0_15, %c0_16] : memref<1x128xf32, #tpu.memory_space<vmem>>, vector<1x128xf32>
    %21 = vector.broadcast %20 : vector<1x128xf32> to vector<24x128xf32>
    %22 = arith.addf %19, %21 : vector<24x128xf32>
    %cst_17 = arith.constant 0.000000e+00 : f32
    %23 = vector.broadcast %cst_17 : f32 to vector<24x128xf32>
    %24 = arith.maximumf %22, %23 : vector<24x128xf32>
    %c0_18 = arith.constant 0 : index
    %c0_19 = arith.constant 0 : index
    %25 = vector.load %arg7[%c0_18, %c0_19] : memref<16x24xf32, #tpu.memory_space<vmem>>, vector<16x24xf32>
    %cst_20 = arith.constant dense<0.000000e+00> : vector<16x128xf32>
    %26 = tpu.matmul %25, %24, %cst_20 {dimension_numbers = #tpu.dot_dimension_numbers<[1], [0], [0], [1], [0, 0, 1, 1], [], []>} : vector<16x24xf32>, vector<24x128xf32>, vector<16x128xf32> -> vector<16x128xf32>
    %c0_21 = arith.constant 0 : index
    %c0_22 = arith.constant 0 : index
    %27 = vector.load %arg8[%c0_21, %c0_22] : memref<128x64xf32, #tpu.memory_space<vmem>>, vector<128x64xf32>
    %cst_23 = arith.constant dense<0.000000e+00> : vector<16x64xf32>
    %28 = tpu.matmul %26, %27, %cst_23 {dimension_numbers = #tpu.dot_dimension_numbers<[1], [0], [0], [1], [0, 0, 1, 1], [], []>} : vector<16x128xf32>, vector<128x64xf32>, vector<16x64xf32> -> vector<16x64xf32>
    %29 = vector.extract_strided_slice %28 {offsets = [0, 0], sizes = [12, 64], strides = [1, 1]} : vector<16x64xf32> to vector<12x64xf32>
    %30 = vector.extract_strided_slice %28 {offsets = [1, 0], sizes = [12, 64], strides = [1, 1]} : vector<16x64xf32> to vector<12x64xf32>
    %31 = vector.extract_strided_slice %28 {offsets = [2, 0], sizes = [12, 64], strides = [1, 1]} : vector<16x64xf32> to vector<12x64xf32>
    %32 = vector.extract_strided_slice %28 {offsets = [3, 0], sizes = [12, 64], strides = [1, 1]} : vector<16x64xf32> to vector<12x64xf32>
    %33 = vector.extract_strided_slice %28 {offsets = [4, 0], sizes = [12, 64], strides = [1, 1]} : vector<16x64xf32> to vector<12x64xf32>
    %34 = tpu.concatenate %29, %30, %31, %32, %33 in 1 : vector<12x64xf32>, vector<12x64xf32>, vector<12x64xf32>, vector<12x64xf32>, vector<12x64xf32> -> vector<12x320xf32>
    %c0_24 = arith.constant 0 : index
    %c0_25 = arith.constant 0 : index
    %35 = vector.load %arg9[%c0_24, %c0_25] : memref<320x64xf32, #tpu.memory_space<vmem>>, vector<320x64xf32>
    %cst_26 = arith.constant dense<0.000000e+00> : vector<12x64xf32>
    %36 = tpu.matmul %34, %35, %cst_26 {dimension_numbers = #tpu.dot_dimension_numbers<[1], [0], [0], [1], [0, 0, 1, 1], [], []>} : vector<12x320xf32>, vector<320x64xf32>, vector<12x64xf32> -> vector<12x64xf32>
    %c0_27 = arith.constant 0 : index
    %c0_28 = arith.constant 0 : index
    %37 = vector.load %arg10[%c0_27, %c0_28] : memref<1x64xf32, #tpu.memory_space<vmem>>, vector<1x64xf32>
    %38 = vector.broadcast %37 : vector<1x64xf32> to vector<12x64xf32>
    %39 = arith.addf %36, %38 : vector<12x64xf32>
    %cst_29 = arith.constant 0.000000e+00 : f32
    %40 = vector.broadcast %cst_29 : f32 to vector<12x64xf32>
    %41 = arith.cmpf ogt, %39, %40 : vector<12x64xf32>
    %cst_30 = arith.constant 0.00999999977 : f32
    %42 = vector.broadcast %cst_30 : f32 to vector<12x64xf32>
    %43 = arith.mulf %42, %39 : vector<12x64xf32>
    %44 = arith.select %41, %39, %43 : vector<12x64xi1>, vector<12x64xf32>
    %c0_31 = arith.constant 0 : index
    %c0_32 = arith.constant 0 : index
    %c0_33 = arith.constant 0 : index
    %45 = vector.load %arg11[%c0_31, %c0_32, %c0_33] : memref<4x2x12xf32, #tpu.memory_space<vmem>>, vector<1x2x12xf32>
    %46 = vector.shape_cast %45 : vector<1x2x12xf32> to vector<2x12xf32>
    %cst_34 = arith.constant dense<0.000000e+00> : vector<2x64xf32>
    %47 = tpu.matmul %46, %44, %cst_34 {dimension_numbers = #tpu.dot_dimension_numbers<[1], [0], [0], [1], [0, 0, 1, 1], [], []>} : vector<2x12xf32>, vector<12x64xf32>, vector<2x64xf32> -> vector<2x64xf32>
    %c1 = arith.constant 1 : index
    %c0_35 = arith.constant 0 : index
    %c0_36 = arith.constant 0 : index
    %48 = vector.load %arg11[%c1, %c0_35, %c0_36] : memref<4x2x12xf32, #tpu.memory_space<vmem>>, vector<1x2x12xf32>
    %49 = vector.shape_cast %48 : vector<1x2x12xf32> to vector<2x12xf32>
    %cst_37 = arith.constant dense<0.000000e+00> : vector<2x64xf32>
    %50 = tpu.matmul %49, %44, %cst_37 {dimension_numbers = #tpu.dot_dimension_numbers<[1], [0], [0], [1], [0, 0, 1, 1], [], []>} : vector<2x12xf32>, vector<12x64xf32>, vector<2x64xf32> -> vector<2x64xf32>
    %c2 = arith.constant 2 : index
    %c0_38 = arith.constant 0 : index
    %c0_39 = arith.constant 0 : index
    %51 = vector.load %arg11[%c2, %c0_38, %c0_39] : memref<4x2x12xf32, #tpu.memory_space<vmem>>, vector<1x2x12xf32>
    %52 = vector.shape_cast %51 : vector<1x2x12xf32> to vector<2x12xf32>
    %cst_40 = arith.constant dense<0.000000e+00> : vector<2x64xf32>
    %53 = tpu.matmul %52, %44, %cst_40 {dimension_numbers = #tpu.dot_dimension_numbers<[1], [0], [0], [1], [0, 0, 1, 1], [], []>} : vector<2x12xf32>, vector<12x64xf32>, vector<2x64xf32> -> vector<2x64xf32>
    %c3 = arith.constant 3 : index
    %c0_41 = arith.constant 0 : index
    %c0_42 = arith.constant 0 : index
    %54 = vector.load %arg11[%c3, %c0_41, %c0_42] : memref<4x2x12xf32, #tpu.memory_space<vmem>>, vector<1x2x12xf32>
    %55 = vector.shape_cast %54 : vector<1x2x12xf32> to vector<2x12xf32>
    %cst_43 = arith.constant dense<0.000000e+00> : vector<2x64xf32>
    %56 = tpu.matmul %55, %44, %cst_43 {dimension_numbers = #tpu.dot_dimension_numbers<[1], [0], [0], [1], [0, 0, 1, 1], [], []>} : vector<2x12xf32>, vector<12x64xf32>, vector<2x64xf32> -> vector<2x64xf32>
    %57 = tpu.concatenate %47, %50, %53, %56 in 1 : vector<2x64xf32>, vector<2x64xf32>, vector<2x64xf32>, vector<2x64xf32> -> vector<2x256xf32>
    %c0_44 = arith.constant 0 : index
    %c0_45 = arith.constant 0 : index
    %58 = vector.load %arg12[%c0_44, %c0_45] : memref<256x128xf32, #tpu.memory_space<vmem>>, vector<256x128xf32>
    %cst_46 = arith.constant dense<0.000000e+00> : vector<2x128xf32>
    %59 = tpu.matmul %57, %58, %cst_46 {dimension_numbers = #tpu.dot_dimension_numbers<[1], [0], [0], [1], [0, 0, 1, 1], [], []>} : vector<2x256xf32>, vector<256x128xf32>, vector<2x128xf32> -> vector<2x128xf32>
    %c0_47 = arith.constant 0 : index
    %c0_48 = arith.constant 0 : index
    %60 = vector.load %arg13[%c0_47, %c0_48] : memref<1x128xf32, #tpu.memory_space<vmem>>, vector<1x128xf32>
    %61 = vector.broadcast %60 : vector<1x128xf32> to vector<2x128xf32>
    %62 = arith.addf %59, %61 : vector<2x128xf32>
    %c0_49 = arith.constant 0 : index
    %c0_50 = arith.constant 0 : index
    %63 = vector.load %arg14[%c0_49, %c0_50] : memref<2x128xf32, #tpu.memory_space<vmem>>, vector<2x128xf32>
    tpu.vector_store %arg14[%c0_49, %c0_50], %62 {strides = array<i32>} : memref<2x128xf32, #tpu.memory_space<vmem>>, vector<2x128xf32>,
    return
  }
}

</mosaic_0001>

<bundles_post_ra>
// kernel: lenet_forward.1
= control target key start
LH: loop header
LB: loop body
LE: loop exit
PB: predicated region body
PF: predicated region fallthrough
CT: control target
= control target key end

     0   :  { %vm223_vm0 = vcmask 392192   ;;  %vm696_vm1 = vcmask 130048   ;;  %vm805_vm2 = vcmask 1044480   ;;  %vm822_vm3 = vcmask 1043456   ;;  %s1493_s22 = smov 32   ;;  %s1494_s23 = smov 72   ;;  %s2892_s1 = inlined_call_operand.vmem [shape: f32[560,144], index: 1, kind: input, shape index: {}]   ;;  %s2893_s0 = inlined_call_operand.vmem [shape: f32[48,560], index: 0, kind: input, shape index: {}]   ;;  %s2894_s2 = inlined_call_operand.vmem [shape: f32[1,144], index: 2, kind: input, shape index: {}]   ;;  %s2895_s3 = inlined_call_operand.vmem [shape: f32[28,48], index: 3, kind: input, shape index: {}]   ;;  %s2896_s4 = inlined_call_operand.vmem [shape: f32[144,72], index: 4, kind: input, shape index: {}]   ;;  %s2897_s5 = inlined_call_operand.vmem [shape: f32[360,128], index: 5, kind: input, shape index: {}]   ;;  %s2898_s6 = inlined_call_operand.vmem [shape: f32[1,128], index: 6, kind: input, shape index: {}]   ;;  %s2899_s8 = inlined_call_operand.vmem [shape: f32[128,64], index: 8, kind: input, shape index: {}]   ;;  %s2900_s7 = inlined_call_operand.vmem [shape: f32[16,24], index: 7, kind: input, shape index: {}]   ;;  %s2901_s9 = inlined_call_operand.vmem [shape: f32[320,64], index: 9, kind: input, shape index: {}]   ;;  %s2902_s10 = inlined_call_operand.vmem [shape: f32[1,64], index: 10, kind: input, shape index: {}]   ;;  %s2903_s11 = inlined_call_operand.vmem [shape: f32[4,2,12], index: 11, kind: input, shape index: {}]   ;;  %s2904_s12 = inlined_call_operand.vmem [shape: f32[256,128], index: 12, kind: input, shape index: {}]   ;;  %s2905_s13 = inlined_call_operand.vmem [shape: f32[1,128], index: 13, kind: input, shape index: {}]   ;;  %s2906_s14 = inlined_call_operand.vmem [shape: f32[2,128], index: 14, kind: output, shape index: {}]  }
   0x1   :  { %v107_v0 = vld [vmem:[%s2892_s1 + $0xf0] sm:$0xff]  ;;  %v105_v2 = vld [vmem:[%s2892_s1 + $0xe0] sm:$0xff]  ;;  %v1792_v60 = vld [vmem:[%s2893_s0 + $0x18] sm:$0xff]  ;;  %vm771_vm4 = vcmask 1046528   ;;  %vm788_vm5 = vcmask 1045504   ;;  %s1495_s24 = smov 16  }
   0x2   :  { %v203_v1 = vld [vmem:[%s2892_s1 + $0x3f0] sm:$0xff]  ;;  %242 = vmatpush.msra.mxu0 %v107_v0  ;;  %v201_v4 = vld [vmem:[%s2892_s1 + $0x3e0] sm:$0xff]  ;;  %v1806_v63 = vld [vmem:[%s2893_s0 + $0x8] sm:$0xff]  ;;  %vm903_vm6 = vcmask 850944   ;;  %vm850_vm7 = vcmask 261120   ;;  %vm839_vm8 = vcmask 588800  }
   0x3   :  { %347 = vmatpush.msra.mxu3 %v203_v1  ;;  %v139_v3 = vld [vmem:[%s2892_s1 + $0x1f0] sm:$0xff]  ;;  %v137_v6 = vld [vmem:[%s2892_s1 + $0x1e0] sm:$0xff]  ;;  %vm846_vm9 = vcmask 719872   ;;  %vm996_vm10 = vcmask 195584   ;;  %vm1093_vm11 = vcmask 523264   ;;  %s1496_s19 = smov 64  }
   0x4   :  { %277 = vmatpush.msra.mxu1 %v139_v3  ;;  %v103_v5 = vld [vmem:[%s2892_s1 + $0xd0] sm:$0xff]  ;;  %243 = vmatpush.msra.mxu0 %v105_v2  ;;  %v101_v9 = vld [vmem:[%s2892_s1 + $0xc0] sm:$0xff]  ;;  %v108_v2 = vld [vmem:[%s2892_s1 + $0xf8] sm:$0xff]  ;;  %vm1222_vm14 = vcmask 97280  }
   0x5   :  { %v199_v7 = vld [vmem:[%s2892_s1 + $0x3d0] sm:$0xff]  ;;  %348 = vmatpush.msra.mxu3 %v201_v4  ;;  %v197_v10 = vld [vmem:[%s2892_s1 + $0x3c0] sm:$0xff]  ;;  %v106_v3 = vld [vmem:[%s2892_s1 + $0xe8] sm:$0xff] }
   0x6   :  { %v135_v8 = vld [vmem:[%s2892_s1 + $0x1d0] sm:$0xff]  ;;  %278 = vmatpush.msra.mxu1 %v137_v6  ;;  %244 = vmatpush.msra.mxu0 %v103_v5  ;;  %v133_v11 = vld [vmem:[%s2892_s1 + $0x1c0] sm:$0xff]  ;;  %v104_v5 = vld [vmem:[%s2892_s1 + $0xd8] sm:$0xff] }
   0x7   :  { %349 = vmatpush.msra.mxu3 %v199_v7  ;;  %v99_v12 = vld [vmem:[%s2892_s1 + $0xb0] sm:$0xff]  ;;  %v97_v16 = vld [vmem:[%s2892_s1 + $0xa0] sm:$0xff]  ;;  %v1842_v6 = vld [vmem:[%s2893_s0 + $0x28] sm:$0xff] }
   0x8   :  { %279 = vmatpush.msra.mxu1 %v135_v8  ;;  %v195_v13 = vld [vmem:[%s2892_s1 + $0x3b0] sm:$0xff]  ;;  %245 = vmatpush.msra.mxu0 %v101_v9  ;;  %v193_v17 = vld [vmem:[%s2892_s1 + $0x3a0] sm:$0xff] }
   0x9   :  { %350 = vmatpush.msra.mxu3 %v197_v10  ;;  %v131_v14 = vld [vmem:[%s2892_s1 + $0x1b0] sm:$0xff]  ;;  %v1632_v18 = vld [vmem:[%s2892_s1 + $0x2e0] sm:$0xff]  ;;  %v102_v10 = vld [vmem:[%s2892_s1 + $0xc8] sm:$0xff] }
   0xa   :  { %v1620_v15 = vld [vmem:[%s2892_s1 + $0x2f0] sm:$0xff]  ;;  %280 = vmatpush.msra.mxu1 %v133_v11  ;;  %246 = vmatpush.msra.mxu0 %v99_v12  ;;  %v129_v19 = vld [vmem:[%s2892_s1 + $0x1a0] sm:$0xff]  ;;  %v100_v11 = vld [vmem:[%s2892_s1 + $0xb8] sm:$0xff] }
   0xb   :  { %1457 = vmatpush.msra.mxu2 %v1620_v15  ;;  %351 = vmatpush.msra.mxu3 %v195_v13  ;;  %v95_v20 = vld [vmem:[%s2892_s1 + $0x90] sm:$0xff]  ;;  %v1655_v24 = vld [vmem:[%s2892_s1 + $0x2c0] sm:$0xff]  ;;  %v98_v12 = vld [vmem:[%s2892_s1 + $0xa8] sm:$0xff] }
   0xc   :  { %281 = vmatpush.msra.mxu1 %v131_v14  ;;  %v191_v21 = vld [vmem:[%s2892_s1 + $0x390] sm:$0xff]  ;;  %247 = vmatpush.msra.mxu0 %v97_v16  ;;  %v93_v25 = vld [vmem:[%s2892_s1 + $0x80] sm:$0xff]  ;;  %v1885_v14 = vld [vmem:[%s2893_s0 + $0x68] sm:$0xff] }
   0xd   :  { %1458 = vmatpush.msra.mxu2 %v1632_v18  ;;  %v1647_v22 = vld [vmem:[%s2892_s1 + $0x2d0] sm:$0xff]  ;;  %352 = vmatpush.msra.mxu3 %v193_v17  ;;  %v189_v26 = vld [vmem:[%s2892_s1 + $0x380] sm:$0xff]  ;;  %v1896_v16 = vld [vmem:[%s2893_s0 + $0x58] sm:$0xff] }
   0xe   :  { %v127_v23 = vld [vmem:[%s2892_s1 + $0x190] sm:$0xff]  ;;  %282 = vmatpush.msra.mxu1 %v129_v19  ;;  %248 = vmatpush.msra.mxu0 %v95_v20  ;;  %v125_v27 = vld [vmem:[%s2892_s1 + $0x180] sm:$0xff]  ;;  %v96_v17 = vld [vmem:[%s2892_s1 + $0x98] sm:$0xff] }
   0xf   :  { %1459 = vmatpush.msra.mxu2 %v1647_v22  ;;  %353 = vmatpush.msra.mxu3 %v191_v21  ;;  %v1670_v28 = vld [vmem:[%s2892_s1 + $0x2b0] sm:$0xff]  ;;  %v1685_v32 = vld [vmem:[%s2892_s1 + $0x2a0] sm:$0xff]  ;;  %v138_v19 = vld [vmem:[%s2892_s1 + $0x1e8] sm:$0xff] }
  0x10   :  { %283 = vmatpush.msra.mxu1 %v127_v23  ;;  %v91_v29 = vld [vmem:[%s2892_s1 + $0x70] sm:$0xff]  ;;  %249 = vmatpush.msra.mxu0 %v93_v25  ;;  %v89_v33 = vld [vmem:[%s2892_s1 + $0x60] sm:$0xff]  ;;  %v94_v20 = vld [vmem:[%s2892_s1 + $0x88] sm:$0xff] }
  0x11   :  { %v187_v30 = vld [vmem:[%s2892_s1 + $0x370] sm:$0xff]  ;;  %1460 = vmatpush.msra.mxu2 %v1655_v24  ;;  %354 = vmatpush.msra.mxu3 %v189_v26  ;;  %v185_v34 = vld [vmem:[%s2892_s1 + $0x360] sm:$0xff]  ;;  %v172_v21 = vld [vmem:[%s2892_s1 + $0x2f8] sm:$0xff] }
  0x12   :  { %v123_v31 = vld [vmem:[%s2892_s1 + $0x170] sm:$0xff]  ;;  %284 = vmatpush.msra.mxu1 %v125_v27  ;;  %250 = vmatpush.msra.mxu0 %v91_v29  ;;  %v121_v35 = vld [vmem:[%s2892_s1 + $0x160] sm:$0xff]  ;;  %v170_v23 = vld [vmem:[%s2892_s1 + $0x2e8] sm:$0xff] }
  0x13   :  { %1461 = vmatpush.msra.mxu2 %v1670_v28  ;;  %355 = vmatpush.msra.mxu3 %v187_v30  ;;  %v1700_v36 = vld [vmem:[%s2892_s1 + $0x290] sm:$0xff]  ;;  %v1715_v40 = vld [vmem:[%s2892_s1 + $0x280] sm:$0xff]  ;;  %v1932_v25 = vld [vmem:[%s2893_s0 + $0x78] sm:$0xff] }
  0x14   :  { %285 = vmatpush.msra.mxu1 %v123_v31  ;;  %v87_v37 = vld [vmem:[%s2892_s1 + $0x50] sm:$0xff]  ;;  %251 = vmatpush.msra.mxu0 %v89_v33  ;;  %v85_v41 = vld [vmem:[%s2892_s1 + $0x40] sm:$0xff]  ;;  %v90_v29 = vld [vmem:[%s2892_s1 + $0x68] sm:$0xff] }
  0x15   :  { %v183_v38 = vld [vmem:[%s2892_s1 + $0x350] sm:$0xff]  ;;  %1462 = vmatpush.msra.mxu2 %v1685_v32  ;;  %356 = vmatpush.msra.mxu3 %v185_v34  ;;  %v181_v42 = vld [vmem:[%s2892_s1 + $0x340] sm:$0xff]  ;;  %v134_v30 = vld [vmem:[%s2892_s1 + $0x1c8] sm:$0xff] }
  0x16   :  { %v119_v39 = vld [vmem:[%s2892_s1 + $0x150] sm:$0xff]  ;;  %286 = vmatpush.msra.mxu1 %v121_v35  ;;  %252 = vmatpush.msra.mxu0 %v87_v37  ;;  %v117_v43 = vld [vmem:[%s2892_s1 + $0x140] sm:$0xff]  ;;  %v168_v31 = vld [vmem:[%s2892_s1 + $0x2d8] sm:$0xff] }
  0x17   :  { %1463 = vmatpush.msra.mxu2 %v1700_v36  ;;  %357 = vmatpush.msra.mxu3 %v183_v38  ;;  %v1730_v44 = vld [vmem:[%s2892_s1 + $0x270] sm:$0xff]  ;;  %v1745_v48 = vld [vmem:[%s2892_s1 + $0x260] sm:$0xff]  ;;  %v132_v33 = vld [vmem:[%s2892_s1 + $0x1b8] sm:$0xff] }
  0x18   :  { %287 = vmatpush.msra.mxu1 %v119_v39  ;;  %v83_v45 = vld [vmem:[%s2892_s1 + $0x30] sm:$0xff]  ;;  %253 = vmatpush.msra.mxu0 %v85_v41  ;;  %v81_v49 = vld [vmem:[%s2892_s1 + $0x20] sm:$0xff]  ;;  %v166_v34 = vld [vmem:[%s2892_s1 + $0x2c8] sm:$0xff] }
  0x19   :  { %v179_v46 = vld [vmem:[%s2892_s1 + $0x330] sm:$0xff]  ;;  %1464 = vmatpush.msra.mxu2 %v1715_v40  ;;  %358 = vmatpush.msra.mxu3 %v181_v42  ;;  %v177_v50 = vld [vmem:[%s2892_s1 + $0x320] sm:$0xff]  ;;  %v130_v35 = vld [vmem:[%s2892_s1 + $0x1a8] sm:$0xff] }
  0x1a   :  { %v115_v47 = vld [vmem:[%s2892_s1 + $0x130] sm:$0xff]  ;;  %288 = vmatpush.msra.mxu1 %v117_v43  ;;  %254 = vmatpush.msra.mxu0 %v83_v45  ;;  %v113_v51 = vld [vmem:[%s2892_s1 + $0x120] sm:$0xff]  ;;  %v1989_v38 = vld [vmem:[%s2893_s0 + $0xb8] sm:$0xff] }
  0x1b   :  { %1465 = vmatpush.msra.mxu2 %v1730_v44  ;;  %359 = vmatpush.msra.mxu3 %v179_v46  ;;  %v1760_v52 = vld [vmem:[%s2892_s1 + $0x250] sm:$0xff]  ;;  %v1775_v56 = vld [vmem:[%s2892_s1 + $0x240] sm:$0xff]  ;;  %v1995_v39 = vld [vmem:[%s2893_s0 + $0xd8] sm:$0xff] }
  0x1c   :  { %289 = vmatpush.msra.mxu1 %v115_v47  ;;  %v79_v53 = vld [vmem:[%s2892_s1 + $0x10] sm:$0xff]  ;;  %255 = vmatpush.msra.mxu0 %v81_v49  ;;  %v77_v57 = vld [vmem:[%s2892_s1] sm:$0xff]  ;;  %v84_v42 = vld [vmem:[%s2892_s1 + $0x38] sm:$0xff] }
  0x1d   :  { %v175_v54 = vld [vmem:[%s2892_s1 + $0x310] sm:$0xff]  ;;  %1466 = vmatpush.msra.mxu2 %v1745_v48  ;;  %360 = vmatpush.msra.mxu3 %v177_v50  ;;  %v173_v58 = vld [vmem:[%s2892_s1 + $0x300] sm:$0xff]  ;;  %v164_v43 = vld [vmem:[%s2892_s1 + $0x2b8] sm:$0xff] }
  0x1e   :  { %v111_v55 = vld [vmem:[%s2892_s1 + $0x110] sm:$0xff]  ;;  %290 = vmatpush.msra.mxu1 %v113_v51  ;;  %256 = vmatpush.msra.mxu0 %v79_v53  ;;  %v1787_v59 = vld [vmem:[%s2893_s0] sm:$0xff]  ;;  %v128_v45 = vld [vmem:[%s2892_s1 + $0x198] sm:$0xff] }
  0x1f   :  { %1467 = vmatpush.msra.mxu2 %v1760_v52  ;;  %361 = vmatpush.msra.mxu3 %v175_v54  ;;  %v109_v61 = vld [vmem:[%s2892_s1 + $0x100] sm:$0xff]  ;;  %v1801_v62 = vld [vmem:[%s2892_s1 + $0x230] sm:$0xff]  ;;  %v82_v46 = vld [vmem:[%s2892_s1 + $0x28] sm:$0xff] }
  0x20   :  { %291 = vmatpush.msra.mxu1 %v111_v55  ;;  %257 = vmatpush.msra.mxu0 %v77_v57  ;;  %v1813_v0 = vld [vmem:[%s2892_s1 + $0x220] sm:$0xff]  ;;  %v1820_v1 = vld [vmem:[%s2892_s1 + $0x210] sm:$0xff]  ;;  %v162_v47 = vld [vmem:[%s2892_s1 + $0x2a8] sm:$0xff] }
  0x21   :  { %1468 = vmatpush.msra.mxu2 %v1775_v56  ;;  %362 = vmatpush.msra.mxu3 %v173_v58  ;;  %v1833_v4 = vld [vmem:[%s2892_s1 + $0x200] sm:$0xff]  ;;  %v1859_v9 = vld [vmem:[%s2893_s0 + $0x30] sm:$0xff]  ;;  %v126_v49 = vld [vmem:[%s2892_s1 + $0x188] sm:$0xff] }
  0x22   :  { %258 = vmatmul.f32.vlgmr.msra.gmra.mxu0 %v1787_v59  ;;  %363 = vmatmul.f32.vlgmr.msra.gmra.mxu3 %v1792_v60  ;;  %v1847_v7 = vld [vmem:[%s2893_s0 + $0x40] sm:$0xff]  ;;  %v1880_v13 = vld [vmem:[%s2893_s0 + $0x50] sm:$0xff]  ;;  %v80_v50 = vld [vmem:[%s2892_s1 + $0x18] sm:$0xff] }
  0x23   :  { %292 = vmatpush.msra.mxu1 %v109_v61  ;;  %1469 = vmatpush.msra.mxu2 %v1801_v62  ;;  %v1853_v8 = vld [vmem:[%s2893_s0 + $0x60] sm:$0xff]  ;;  %v1937_v26 = vld [vmem:[%s2893_s0 + $0x90] sm:$0xff]  ;;  %v160_v51 = vld [vmem:[%s2892_s1 + $0x298] sm:$0xff] }
  0x24   :  { %293 = vmatmul.f32.vlgmr.msra.gmra.mxu1 %v1806_v63  ;;  %312 = vmatpush.msrb.mxu0 %v1620_v15  ;;  %v1891_v15 = vld [vmem:[%s2893_s0 + $0x88] sm:$0xff]  ;;  %v1943_v27 = vld [vmem:[%s2893_s0 + $0xb0] sm:$0xff]  ;;  %v1984_v37 = vld [vmem:[%s2893_s0 + $0xa0] sm:$0xff] }
  0x25   :  { %1470 = vmatpush.msra.mxu2 %v1813_v0  ;;  %417 = vmatpush.msrb.mxu1 %v108_v2  ;;  %v215_v41 = vld [vmem:[%s2892_s1 + $0x450] sm:$0xff]  ;;  %v2049_v53 = vld [vmem:[%s2893_s0 + $0xe0] sm:$0xff]  ;;  %v78_v55 = vld [vmem:[%s2892_s1 + $0x8] sm:$0xff] }
  0x26   :  { %313 = vmatpush.msrb.mxu0 %v1632_v18  ;;  %v140_v18 = vld [vmem:[%s2892_s1 + $0x1f8] sm:$0xff]  ;;  %487 = vmatpush.msrb.mxu3 %v172_v21  ;;  %v209_v54 = vld [vmem:[%s2892_s1 + $0x420] sm:$0xff]  ;;  %v207_v58 = vld [vmem:[%s2892_s1 + $0x410] sm:$0xff] }
  0x27   :  { %1471 = vmatpush.msra.mxu2 %v1820_v1  ;;  %418 = vmatpush.msrb.mxu1 %v106_v3  ;;  %v124_v57 = vld [vmem:[%s2892_s1 + $0x178] sm:$0xff]  ;;  %v158_v61 = vld [vmem:[%s2892_s1 + $0x288] sm:$0xff] }
  0x28   :  { %314 = vmatpush.msrb.mxu0 %v1647_v22  ;;  %v136_v22 = vld [vmem:[%s2892_s1 + $0x1d8] sm:$0xff]  ;;  %488 = vmatpush.msrb.mxu3 %v170_v23  ;;  %v154_v3 = vld [vmem:[%s2892_s1 + $0x268] sm:$0xff] }
  0x29   :  { %1472 = vmatpush.msra.mxu2 %v1833_v4  ;;  %419 = vmatpush.msrb.mxu1 %v104_v5  ;;  %v120_v2 = vld [vmem:[%s2892_s1 + $0x158] sm:$0xff]  ;;  %v118_v5 = vld [vmem:[%s2892_s1 + $0x148] sm:$0xff] }
  0x2a   :  { %261 = vmatmul.f32.gmra.mxu0 %v1842_v6  ;;  %366 = vmatmul.f32.gmra.mxu3 %v1847_v7  ;;  %v200_v21 = vld [vmem:[%s2892_s1 + $0x3d8] sm:$0xff]  ;;  %v198_v23 = vld [vmem:[%s2892_s1 + $0x3c8] sm:$0xff] }
  0x2b   :  { %334 = vmatmul.f32.vlgmr.msra.gmra.mxu2 %v1853_v8  ;;  %315 = vmatpush.msrb.mxu0 %v1655_v24  ;;  %v92_v24 = vld [vmem:[%s2892_s1 + $0x78] sm:$0xff] }
  0x2c   :  { %296 = vmatmul.f32.gmra.mxu1 %v1859_v9  ;;  %452 = vmatpush.msrb.mxu2 %v140_v18  ;;  %v114_v18 = vld [vmem:[%s2892_s1 + $0x128] sm:$0xff] }
  0x2d   :  { %316 = vmatpush.msrb.mxu0 %v1670_v28  ;;  %420 = vmatpush.msrb.mxu1 %v102_v10  ;;  %v1948_v28 = vld [vmem:[%s2893_s0 + $0x80] sm:$0xff]  ;;  %v152_v10 = vld [vmem:[%s2892_s1 + $0x258] sm:$0xff] }
  0x2e   :  { %453 = vmatpush.msrb.mxu2 %v138_v19  ;;  %489 = vmatpush.msrb.mxu3 %v168_v31  ;;  %v202_v19 = vld [vmem:[%s2892_s1 + $0x3e8] sm:$0xff] }
  0x2f   :  { %317 = vmatpush.msrb.mxu0 %v1685_v32  ;;  %421 = vmatpush.msrb.mxu1 %v100_v11  ;;  %v88_v32 = vld [vmem:[%s2892_s1 + $0x58] sm:$0xff]  ;;  %v142_v31 = vld [vmem:[%s2892_s1 + $0x208] sm:$0xff] }
  0x30   :  { %454 = vmatpush.msrb.mxu2 %v136_v22  ;;  %490 = vmatpush.msrb.mxu3 %v166_v34  ;;  %v116_v11 = vld [vmem:[%s2892_s1 + $0x138] sm:$0xff] }
  0x31   :  { %318 = vmatpush.msrb.mxu0 %v1700_v36  ;;  %422 = vmatpush.msrb.mxu1 %v98_v12  ;;  %v86_v36 = vld [vmem:[%s2892_s1 + $0x48] sm:$0xff]  ;;  %v112_v22 = vld [vmem:[%s2892_s1 + $0x118] sm:$0xff] }
  0x32   :  { %264 = vmatmul.f32.gmra.mxu0 %v1880_v13  ;;  %369 = vmatmul.f32.gmra.mxu3 %v1885_v14  ;;  %v150_v12 = vld [vmem:[%s2892_s1 + $0x248] sm:$0xff]  ;;  %v192_v34 = vld [vmem:[%s2892_s1 + $0x398] sm:$0xff] }
  0x33   :  { %337 = vmatmul.f32.gmra.mxu2 %v1891_v15  ;;  %319 = vmatpush.msrb.mxu0 %v1715_v40  ;;  %v2000_v40 = vld [vmem:[%s2893_s0 + $0xa8] sm:$0xff] }
  0x34   :  { %299 = vmatmul.f32.gmra.mxu1 %v1896_v16  ;;  %455 = vmatpush.msrb.mxu2 %v134_v30  ;;  %v144_v30 = vld [vmem:[%s2892_s1 + $0x218] sm:$0xff] }
  0x35   :  { %320 = vmatpush.msrb.mxu0 %v1730_v44  ;;  %423 = vmatpush.msrb.mxu1 %v96_v17  ;;  %v213_v44 = vld [vmem:[%s2892_s1 + $0x440] sm:$0xff]  ;;  %v204_v17 = vld [vmem:[%s2892_s1 + $0x3f8] sm:$0xff] }
  0x36   :  { %456 = vmatpush.msrb.mxu2 %v132_v33  ;;  %491 = vmatpush.msrb.mxu3 %v164_v43  ;;  %v194_v33 = vld [vmem:[%s2892_s1 + $0x3a8] sm:$0xff]  ;;  %v180_v43 = vld [vmem:[%s2892_s1 + $0x338] sm:$0xff] }
  0x37   :  { %321 = vmatpush.msrb.mxu0 %v1745_v48  ;;  %424 = vmatpush.msrb.mxu1 %v94_v20  ;;  %v211_v48 = vld [vmem:[%s2892_s1 + $0x430] sm:$0xff]  ;;  %v148_v20 = vld [vmem:[%s2892_s1 + $0x238] sm:$0xff] }
  0x38   :  { %457 = vmatpush.msrb.mxu2 %v130_v35  ;;  %492 = vmatpush.msrb.mxu3 %v162_v47  ;;  %v51_v35 = vld [vmem:[%s2893_s0 + $0x20] sm:$0xff]  ;;  %v61_v47 = vld [vmem:[%s2893_s0 + $0x70] sm:$0xff] }
  0x39   :  { %322 = vmatpush.msrb.mxu0 %v1760_v52  ;;  %425 = vmatpush.msrb.mxu1 %v92_v24  ;;  %v2044_v52 = vld [vmem:[%s2893_s0 + $0xc8] sm:$0xff]  ;;  %v54_v24 = vld [vmem:[%s2893_s0 + $0x38] sm:$0xff] }
  0x3a   :  { %267 = vmatmul.f32.gmra.mxu0 %v1932_v25  ;;  %372 = vmatmul.f32.gmra.mxu3 %v1937_v26 }
  0x3b   :  { %340 = vmatmul.f32.gmra.mxu2 %v1943_v27  ;;  %323 = vmatpush.msrb.mxu0 %v1775_v56  ;;  %v2060_v56 = vld [vmem:[%s2893_s0 + $0xd0] sm:$0xff] }
  0x3c   :  { %302 = vmatmul.f32.gmra.mxu1 %v1948_v28  ;;  %458 = vmatpush.msrb.mxu2 %v128_v45  ;;  %v178_v45 = vld [vmem:[%s2892_s1 + $0x328] sm:$0xff] }
  0x3d   :  { %324 = vmatpush.msrb.mxu0 %v1801_v62  ;;  %426 = vmatpush.msrb.mxu1 %v90_v29  ;;  %v122_v62 = vld [vmem:[%s2892_s1 + $0x168] sm:$0xff] }
  0x3e   :  { %459 = vmatpush.msrb.mxu2 %v126_v49  ;;  %493 = vmatpush.msrb.mxu3 %v160_v51  ;;  %v110_v29 = vld [vmem:[%s2892_s1 + $0x108] sm:$0xff] }
  0x3f   :  { %325 = vmatpush.msrb.mxu0 %v1813_v0  ;;  %427 = vmatpush.msrb.mxu1 %v88_v32  ;;  %v205_v0 = vld [vmem:[%s2892_s1 + $0x400] sm:$0xff]  ;;  %v196_v32 = vld [vmem:[%s2892_s1 + $0x3b8] sm:$0xff]  ;;  %v206_v49 = vld [vmem:[%s2892_s1 + $0x408] sm:$0xff] }
  0x40   :  { %460 = vmatpush.msrb.mxu2 %v124_v57  ;;  %494 = vmatpush.msrb.mxu3 %v158_v61 }
  0x41   :  { %326 = vmatpush.msrb.mxu0 %v1820_v1  ;;  %428 = vmatpush.msrb.mxu1 %v86_v36  ;;  %v156_v1 = vld [vmem:[%s2892_s1 + $0x278] sm:$0xff] }
  0x42   :  { %270 = vmatmul.f32.gmra.mxu0 %v1984_v37  ;;  %375 = vmatmul.f32.gmra.mxu3 %v1989_v38  ;;  %v216_v36 = vld [vmem:[%s2892_s1 + $0x458] sm:$0xff] }
  0x43   :  { %343 = vmatmul.f32.gmra.mxu2 %v1995_v39  ;;  %327 = vmatpush.msrb.mxu0 %v1833_v4  ;;  %v49_v4 = vld [vmem:[%s2893_s0 + $0x10] sm:$0xff] }
  0x44   :  { %305 = vmatmul.f32.gmra.mxu1 %v2000_v40  ;;  %461 = vmatpush.msrb.mxu2 %v122_v62 }
  0x45   :  { %392 = vmatpush.msra.mxu0 %v215_v41  ;;  %429 = vmatpush.msrb.mxu1 %v84_v42  ;;  %v186_v41 = vld [vmem:[%s2892_s1 + $0x368] sm:$0xff]  ;;  %v184_v42 = vld [vmem:[%s2892_s1 + $0x358] sm:$0xff] }
  0x46   :  { %495 = vmatpush.msrb.mxu3 %v156_v1  ;;  %462 = vmatpush.msrb.mxu2 %v120_v2 }
  0x47   :  { %393 = vmatpush.msra.mxu0 %v213_v44  ;;  %430 = vmatpush.msrb.mxu1 %v82_v46  ;;  %v214_v44 = vld [vmem:[%s2892_s1 + $0x448] sm:$0xff]  ;;  %v212_v46 = vld [vmem:[%s2892_s1 + $0x438] sm:$0xff] }
  0x48   :  { %496 = vmatpush.msrb.mxu3 %v154_v3  ;;  %463 = vmatpush.msrb.mxu2 %v118_v5 }
  0x49   :  { %394 = vmatpush.msra.mxu0 %v211_v48  ;;  %431 = vmatpush.msrb.mxu1 %v80_v50  ;;  %v174_v48 = vld [vmem:[%s2892_s1 + $0x308] sm:$0xff]  ;;  %v66_v50 = vld [vmem:[%s2893_s0 + $0x98] sm:$0xff] }
  0x4a   :  { %273 = vmatmul.f32.gmra.mxu0 %v2044_v52  ;;  %378 = vmatmul.f32.gmra.mxu3 %v2049_v53 }
  0x4b   :  { %395 = vmatpush.msra.mxu0 %v209_v54  ;;  %432 = vmatpush.msrb.mxu1 %v78_v55 }
  0x4c   :  { %308 = vmatmul.f32.gmra.mxu1 %v2060_v56  ;;  %497 = vmatpush.msrb.mxu3 %v152_v10 }
  0x4d   :  { %396 = vmatpush.msra.mxu0 %v207_v58  ;;  %464 = vmatpush.msrb.mxu2 %v116_v11 }
  0x4e   :  { %498 = vmatpush.msrb.mxu3 %v150_v12  ;;  %567 = vmatpush.msra.mxu1 %v216_v36 }
  0x4f   :  { %397 = vmatpush.msra.mxu0 %v205_v0  ;;  %465 = vmatpush.msrb.mxu2 %v114_v18 }
  0x50   :  { %499 = vmatpush.msrb.mxu3 %v148_v20  ;;  %568 = vmatpush.msra.mxu1 %v214_v44  ;;  %v2259_v20 = vld [vmem:[%s2894_s2] sm:$0x3] }
  0x51   :  { %466 = vmatpush.msrb.mxu2 %v112_v22  ;;  %v219_v22 = vperm.slane %v2259_v20, 0 }
  0x52   :  { %328 = vmatmul.f32.vlgmr.msrb.gmra.mxu0 %v49_v4  ;;  %569 = vmatpush.msra.mxu1 %v212_v46 }
  0x53   :  { %522 = vmatpush.msrb.mxu0 %v204_v17  ;;  %467 = vmatpush.msrb.mxu2 %v110_v29 }
  0x54   :  { %433 = vmatmul.f32.vlgmr.msrb.gmra.mxu1 %v1787_v59  ;;  %v146_v59 = vld [vmem:[%s2892_s1 + $0x228] sm:$0xff]  ;;  %468 = vmatmul.f32.vlgmr.msrb.gmra.mxu2 %v1806_v63 }
  0x55   :  { %523 = vmatpush.msrb.mxu0 %v202_v19  ;;  %500 = vmatpush.msrb.mxu3 %v146_v59  ;;  %v190_v63 = vld [vmem:[%s2892_s1 + $0x388] sm:$0xff] }
  0x57   :  { %524 = vmatpush.msrb.mxu0 %v200_v21  ;;  %501 = vmatpush.msrb.mxu3 %v144_v30 }
  0x59   :  { %525 = vmatpush.msrb.mxu0 %v198_v23  ;;  %502 = vmatpush.msrb.mxu3 %v142_v31 }
  0x5a   :  { %331 = vmatmul.f32.gmra.mxu0 %v54_v24  ;;  %503 = vmatmul.f32.vlgmr.msrb.gmra.mxu3 %v49_v4 }
  0x5b   :  { %526 = vmatpush.msrb.mxu0 %v196_v32  ;;  %1473 = vmatpush.msra.mxu3 %v216_v36 }
  0x5c   :  { %436 = vmatmul.f32.gmra.mxu1 %v1842_v6  ;;  %v188_v6 = vld [vmem:[%s2892_s1 + $0x378] sm:$0xff]  ;;  %471 = vmatmul.f32.gmra.mxu2 %v1859_v9  ;;  %v56_v9 = vld [vmem:[%s2893_s0 + $0x48] sm:$0xff] }
  0x5d   :  { %527 = vmatpush.msrb.mxu0 %v194_v33  ;;  %1474 = vmatpush.msra.mxu3 %v214_v44 }
  0x5f   :  { %528 = vmatpush.msrb.mxu0 %v192_v34  ;;  %1475 = vmatpush.msra.mxu3 %v212_v46 }
  0x61   :  { %529 = vmatpush.msrb.mxu0 %v190_v63 }
  0x62   :  { %1415 = vmatmul.msk.f32.vlgmr.msra.gmra.mxu0 %vm223_vm0, %v51_v35  ;;  %506 = vmatmul.f32.gmra.mxu3 %v54_v24 }
  0x63   :  { %530 = vmatpush.msrb.mxu0 %v188_v6 }
  0x64   :  { %439 = vmatmul.f32.gmra.mxu1 %v1880_v13  ;;  %v182_v13 = vld [vmem:[%s2892_s1 + $0x348] sm:$0xff]  ;;  %474 = vmatmul.f32.gmra.mxu2 %v1896_v16  ;;  %v176_v16 = vld [vmem:[%s2892_s1 + $0x318] sm:$0xff] }
  0x65   :  { %531 = vmatpush.msrb.mxu0 %v186_v41 }
  0x67   :  { %532 = vmatpush.msrb.mxu0 %v184_v42 }
  0x69   :  { %533 = vmatpush.msrb.mxu0 %v182_v13 }
  0x6a   :  { %1416 = vmatmul.msk.f32.gmra.mxu0 %vm223_vm0, %v56_v9  ;;  %509 = vmatmul.f32.gmra.mxu3 %v1853_v8  ;;  %v208_v8 = vld [vmem:[%s2892_s1 + $0x418] sm:$0xff] }
  0x6b   :  { %534 = vmatpush.msrb.mxu0 %v180_v43 }
  0x6c   :  { %442 = vmatmul.f32.gmra.mxu1 %v1932_v25  ;;  %v210_v25 = vld [vmem:[%s2892_s1 + $0x428] sm:$0xff]  ;;  %477 = vmatmul.f32.gmra.mxu2 %v1948_v28  ;;  %v71_v28 = vld [vmem:[%s2893_s0 + $0xc0] sm:$0xff] }
  0x6d   :  { %535 = vmatpush.msrb.mxu0 %v178_v45  ;;  %570 = vmatpush.msra.mxu1 %v210_v25 }
  0x6e   :  { %1476 = vmatpush.msra.mxu3 %v210_v25 }
  0x6f   :  { %536 = vmatpush.msrb.mxu0 %v176_v16  ;;  %571 = vmatpush.msra.mxu1 %v208_v8 }
  0x70   :  { %1477 = vmatpush.msra.mxu3 %v208_v8 }
  0x71   :  { %537 = vmatpush.msrb.mxu0 %v174_v48  ;;  %572 = vmatpush.msra.mxu1 %v206_v49 }
  0x72   :  { %1417 = vmatmul.msk.f32.gmra.mxu0 %vm223_vm0, %v61_v47  ;;  %512 = vmatmul.f32.gmra.mxu3 %v1891_v15  ;;  %v76_v15 = vld [vmem:[%s2893_s0 + $0xe8] sm:$0xff] }
  0x73   :  { %1478 = vmatpush.msra.mxu3 %v206_v49 }
  0x74   :  { %445 = vmatmul.f32.gmra.mxu1 %v1984_v37  ;;  %480 = vmatmul.f32.gmra.mxu2 %v2000_v40 }
  0x7a   :  { %1418 = vmatmul.msk.f32.gmra.mxu0 %vm223_vm0, %v66_v50  ;;  %515 = vmatmul.f32.gmra.mxu3 %v1943_v27 }
  0x7c   :  { %448 = vmatmul.f32.gmra.mxu1 %v2044_v52  ;;  %483 = vmatmul.f32.gmra.mxu2 %v2060_v56 }
  0x82   :  { %1419 = vmatmul.msk.f32.gmra.mxu0 %vm223_vm0, %v71_v28  ;;  %518 = vmatmul.f32.gmra.mxu3 %v1995_v39 }
  0x84   :  { %1421 = vmatmul.msk.f32.vlgmr.msra.gmra.mxu1 %vm223_vm0, %v51_v35 }
  0x8a   :  { %1420 = vmatmul.msk.f32.gmra.mxu0 %vm223_vm0, %v76_v15  ;;  %1425 = vmatmul.msk.f32.vlgmr.msra.gmra.mxu3 %vm223_vm0, %v71_v28 }
  0x8c   :  { %1422 = vmatmul.msk.f32.gmra.mxu1 %vm223_vm0, %v56_v9 }
  0x92   :  { %538 = vmatmul.f32.vlgmr.msrb.gmra.mxu0 %v1792_v60  ;;  %1426 = vmatmul.msk.f32.gmra.mxu3 %vm223_vm0, %v76_v15 }
  0x94   :  { %1423 = vmatmul.msk.f32.gmra.mxu1 %vm223_vm0, %v61_v47 }
  0x9a   :  { %541 = vmatmul.f32.gmra.mxu0 %v1847_v7 }
  0x9c   :  { %1424 = vmatmul.msk.f32.gmra.mxu1 %vm223_vm0, %v66_v50 }
  0x9f   :  { %v259_v27 = vpop.f32.mrf.mxu0 }
  0xa0   :  { %v260_v9 = vadd.f32 %v259_v27, %v219_v22 }
  0xa1   :  { %v294_v37 = vpop.f32.mrf.mxu1 }
  0xa2   :  { %544 = vmatmul.f32.gmra.mxu0 %v1885_v14  ;;  %v295_v47 = vadd.f32 %v294_v37, %v260_v9 }
  0xa5   :  { %v2245_v54 = vpop.f32.mrf.mxu3 }
  0xa7   :  { %v262_v39 = vpop.f32.mrf.mxu0 }
  0xa8   :  { %v263_v6 = vadd.f32 %v262_v39, %v219_v22 }
  0xa9   :  { %v297_v40 = vpop.f32.mrf.mxu1 }
  0xaa   :  { %547 = vmatmul.f32.gmra.mxu0 %v1937_v26  ;;  %v298_v43 = vadd.f32 %v297_v40, %v263_v6 }
  0xad   :  { %v367_v56 = vpop.f32.mrf.mxu3 }
  0xae   :  { %v335_v62 = vpop.f32.mrf.mxu2 }
  0xaf   :  { %v265_v51 = vpop.f32.mrf.mxu0 }
  0xb0   :  { %v266_v32 = vadd.f32 %v265_v51, %v219_v22 }
  0xb1   :  { %v300_v52 = vpop.f32.mrf.mxu1 }
  0xb2   :  { %550 = vmatmul.f32.gmra.mxu0 %v1989_v38  ;;  %v301_v36 = vadd.f32 %v300_v52, %v266_v32 }
  0xb4   :  { %v336_v44 = vadd.f32 %v335_v62, %v301_v36 }
  0xb5   :  { %v370_v14 = vpop.f32.mrf.mxu3 }
  0xb6   :  { %v338_v3 = vpop.f32.mrf.mxu2  ;;  %v371_v39 = vadd.f32 %v370_v14, %v336_v44 }
  0xb7   :  { %v268_v60 = vpop.f32.mrf.mxu0 }
  0xb8   :  { %v269_v24 = vadd.f32 %v268_v60, %v219_v22 }
  0xb9   :  { %v303_v55 = vpop.f32.mrf.mxu1 }
  0xba   :  { %553 = vmatmul.f32.gmra.mxu0 %v2049_v53  ;;  %v304_v63 = vadd.f32 %v303_v55, %v269_v24 }
  0xbc   :  { %v339_v13 = vadd.f32 %v338_v3, %v304_v63 }
  0xbd   :  { %v373_v26 = vpop.f32.mrf.mxu3 }
  0xbe   :  { %v341_v53 = vpop.f32.mrf.mxu2  ;;  %v374_v49 = vadd.f32 %v373_v26, %v339_v13 }
  0xbf   :  { %v271_v7 = vpop.f32.mrf.mxu0 }
  0xc0   :  { %v272_v59 = vadd.f32 %v271_v7, %v219_v22 }
  0xc1   :  { %v306_v58 = vpop.f32.mrf.mxu1 }
  0xc2   :  { %v307_v33 = vadd.f32 %v306_v58, %v272_v59 }
  0xc4   :  { %v342_v41 = vadd.f32 %v341_v53, %v307_v33 }
  0xc5   :  { %v376_v4 = vpop.f32.mrf.mxu3 }
  0xc6   :  { %v344_v19 = vpop.f32.mrf.mxu2  ;;  %v377_v45 = vadd.f32 %v376_v4, %v342_v41 }
  0xc7   :  { %v274_v57 = vpop.f32.mrf.mxu0 }
  0xc8   :  { %v275_v23 = vadd.f32 %v274_v57, %v219_v22  ;;  %v220_v22 = vperm.slane %v2259_v20, 1 }
  0xc9   :  { %v309_v0 = vpop.f32.mrf.mxu1 }
  0xca   :  { %v310_v34 = vadd.f32 %v309_v0, %v275_v23 }
  0xcc   :  { %v345_v42 = vadd.f32 %v344_v19, %v310_v34  ;;  %v2287_v34 = vld [vmem:[%s2895_s3 + $0x8] sm:$0xff] }
  0xcd   :  { %v379_v11 = vpop.f32.mrf.mxu3 }
  0xce   :  { %v380_v46 = vadd.f32 %v379_v11, %v345_v42 }
  0xcf   :  { %v329_v61 = vpop.f32.mrf.mxu0 }
  0xd0   :  { %v330_v51 = vadd.f32 %v329_v61, %v295_v47 }
  0xd1   :  { %v2248_v2 = vpop.f32.mrf.mxu1 }
  0xd2   :  { %v365_v55 = vadd.f32 %v2245_v54, %v330_v51 }
  0xd7   :  { %v332_v1 = vpop.f32.mrf.mxu0  ;;  %v2262_v29 = vpop.f32.mrf.mxu2 }
  0xd8   :  { %v333_v50 = vadd.f32 %v332_v1, %v298_v43 }
  0xd9   :  { %v2250_v10 = vpop.f32.mrf.mxu1 }
  0xda   :  { %v368_v52 = vadd.f32 %v367_v56, %v333_v50  ;;  %v438_v20 = vadd.f32 %v2250_v10, %v220_v22 }
  0xdd   :  { %v2254_v18 = vpop.f32.mrf.mxu3 }
  0xdf   :  { %v399_v38 = vpop.f32.mrf.mxu0  ;;  %v2268_v16 = vpop.f32.mrf.mxu2 }
  0xe0   :  { %v400_v62 = vadd.f32 %v399_v38, %v365_v55  ;;  %v2278_v38 = vld [vmem:[%s2895_s3] sm:$0xff]  ;;  %v473_v43 = vadd.f32 %v2268_v16, %v438_v20 }
  0xe1   :  { %v2252_v17 = vpop.f32.mrf.mxu1 }
  0xe2   :  { %v592_v3 = vmax.f32 %v400_v62, 0.0  ;;  %v441_v6 = vadd.f32 %v2252_v17, %v220_v22  ;;  %v2298_v17 = vld [vmem:[%s2895_s3 + $0x10] sm:$0xff]  ;;  %v691_v62 = vld [vmem:[%s2896_s4 + $0x68] sm:$0xff] }
  0xe5   :  { %v2266_v31 = vpop.f32.mrf.mxu3 }
  0xe6   :  { %v508_v16 = vadd.f32 %v2266_v31, %v473_v43  ;;  %v692_v31 = vld [vmem:[%s2896_s4 + $0x70] sm:$0xff] }
  0xe7   :  { %v402_v5 = vpop.f32.mrf.mxu0  ;;  %v475_v26 = vpop.f32.mrf.mxu2 }
  0xe8   :  { %v403_v57 = vadd.f32 %v402_v5, %v368_v52  ;;  %v476_v9 = vadd.f32 %v475_v26, %v441_v6  ;;  %v690_v26 = vld [vmem:[%s2896_s4 + $0x60] sm:$0xff] }
  0xe9   :  { %v2264_v30 = vpop.f32.mrf.mxu1 }
  0xea   :  { %v594_v61 = vmax.f32 %v403_v57, 0.0  ;;  %v444_v24 = vadd.f32 %v2264_v30, %v220_v22  ;;  %v435_v30 = vadd.f32 %v2248_v2, %v220_v22 }
  0xec   :  { %v470_v10 = vadd.f32 %v2262_v29, %v435_v30 }
  0xed   :  { %v2270_v8 = vpop.f32.mrf.mxu3 }
  0xee   :  { %v505_v51 = vadd.f32 %v2254_v18, %v470_v10  ;;  %v693_v18 = vld [vmem:[%s2896_s4 + $0x78] sm:$0xff] }
  0xef   :  { %v405_v12 = vpop.f32.mrf.mxu0  ;;  %v478_v4 = vpop.f32.mrf.mxu2 }
  0xf0   :  { %v406_v40 = vadd.f32 %v405_v12, %v371_v39  ;;  %v479_v41 = vadd.f32 %v478_v4, %v444_v24  ;;  %v686_v4 = vld [vmem:[%s2896_s4 + $0x40] sm:$0xff] }
  0xf1   :  { %v446_v25 = vpop.f32.mrf.mxu1 }
  0xf2   :  { %v596_v0 = vmax.f32 %v406_v40, 0.0  ;;  %v447_v59 = vadd.f32 %v446_v25, %v220_v22 }
  0xf5   :  { %v513_v14 = vpop.f32.mrf.mxu3 }
  0xf6   :  { %v514_v44 = vadd.f32 %v513_v14, %v479_v41  ;;  %v689_v14 = vld [vmem:[%s2896_s4 + $0x58] sm:$0xff] }
  0xf7   :  { %v408_v21 = vpop.f32.mrf.mxu0  ;;  %v481_v11 = vpop.f32.mrf.mxu2 }
  0xf8   :  { %v409_v60 = vadd.f32 %v408_v21, %v374_v49  ;;  %v482_v36 = vadd.f32 %v481_v11, %v447_v59  ;;  %v682_v11 = vld [vmem:[%s2896_s4 + $0x20] sm:$0xff] }
  0xf9   :  { %v449_v1 = vpop.f32.mrf.mxu1 }
  0xfa   :  { %v598_v58 = vmax.f32 %v409_v60, 0.0  ;;  %v450_v32 = vadd.f32 %v449_v1, %v220_v22  ;;  %v694_v22 = vld [vmem:[%s2896_s4 + $0x80] sm:$0xff] }
  0xfd   :  { %v516_v54 = vpop.f32.mrf.mxu3 }
  0xfe   :  { %v517_v13 = vadd.f32 %v516_v54, %v482_v36  ;;  %v684_v54 = vld [vmem:[%s2896_s4 + $0x30] sm:$0xff] }
  0xff   :  { %v411_v35 = vpop.f32.mrf.mxu0  ;;  %v484_v33 = vpop.f32.mrf.mxu2 }
 0x100   :  { %v412_v28 = vadd.f32 %v411_v35, %v377_v45  ;;  %v485_v42 = vadd.f32 %v484_v33, %v450_v32 }
 0x101   :  { %v574_v53 = vpop.f32.mrf.mxu1 }
 0x102   :  { %v600_v7 = vmax.f32 %v412_v28, 0.0 }
 0x105   :  { %v519_v19 = vpop.f32.mrf.mxu3 }
 0x106   :  { %v520_v45 = vadd.f32 %v519_v19, %v485_v42  ;;  %v680_v19 = vld [vmem:[%s2896_s4 + $0x10] sm:$0xff] }
 0x107   :  { %v414_v48 = vpop.f32.mrf.mxu0 }
 0x108   :  { %v415_v15 = vadd.f32 %v414_v48, %v380_v46  ;;  %v511_v48 = vadd.f32 %v2270_v8, %v476_v9 }
 0x109   :  { %v577_v12 = vpop.f32.mrf.mxu1 }
 0x10a   :  { %v602_v27 = vmax.f32 %v415_v15, 0.0 }
 0x10c   :  { %630 = vmatpush.msra.mxu2 %v602_v27 }
 0x10d   :  { %v586_v23 = vpop.f32.mrf.mxu3 }
 0x10e   :  { %631 = vmatpush.msra.mxu2 %v600_v7  ;;  %v607_v7 = vld [vmem:[%s2895_s3 + $0x18] sm:$0xf] }
 0x10f   :  { %v2273_v37 = vpop.f32.mrf.mxu0 }
 0x110   :  { %632 = vmatpush.msra.mxu2 %v598_v58  ;;  %v540_v29 = vadd.f32 %v2273_v37, %v505_v51 }
 0x111   :  { %v580_v35 = vpop.f32.mrf.mxu1 }
 0x112   :  { %633 = vmatpush.msra.mxu2 %v596_v0  ;;  %v575_v58 = vadd.f32 %v574_v53, %v540_v29  ;;  %v685_v53 = vld [vmem:[%s2896_s4 + $0x38] sm:$0xff] }
 0x114   :  { %634 = vmatpush.msra.mxu2 %v594_v61  ;;  %v593_v1 = vmax.f32 %v575_v58, 0.0  ;;  %v695_v61 = vld [vmem:[%s2896_s4 + $0x88] sm:$0xff] }
 0x115   :  { %v589_v47 = vpop.f32.mrf.mxu3 }
 0x116   :  { %635 = vmatpush.msra.mxu2 %v592_v3  ;;  %v688_v3 = vld [vmem:[%s2896_s4 + $0x50] sm:$0xff] }
 0x117   :  { %v542_v56 = vpop.f32.mrf.mxu0  ;;  %1427 = vmatmul.msk.f32.vlgmr.msra.gmra.mxu2 %vm223_vm0, %v2278_v38 }
 0x118   :  { %v543_v60 = vadd.f32 %v542_v56, %v508_v16  ;;  %709 = vmatpush.msrb.mxu2 %v693_v18  ;;  %v687_v56 = vld [vmem:[%s2896_s4 + $0x48] sm:$0xff] }
 0x119   :  { %v583_v50 = vpop.f32.mrf.mxu1 }
 0x11a   :  { %v578_v55 = vadd.f32 %v577_v12, %v543_v60  ;;  %710 = vmatpush.msrb.mxu2 %v692_v31  ;;  %v681_v12 = vld [vmem:[%s2896_s4 + $0x18] sm:$0xff] }
 0x11c   :  { %v595_v0 = vmax.f32 %v578_v55, 0.0  ;;  %711 = vmatpush.msrb.mxu2 %v691_v62 }
 0x11e   :  { %712 = vmatpush.msrb.mxu2 %v690_v26 }
 0x11f   :  { %v545_v5 = vpop.f32.mrf.mxu0  ;;  %1428 = vmatmul.msk.f32.gmra.mxu2 %vm223_vm0, %v2287_v34 }
 0x120   :  { %v546_v28 = vadd.f32 %v545_v5, %v511_v48  ;;  %713 = vmatpush.msrb.mxu2 %v689_v14  ;;  %v683_v5 = vld [vmem:[%s2896_s4 + $0x28] sm:$0xff]  ;;  %v868_v14 = vld [vmem:[%s2897_s5 + $0x70] sm:$0xff] }
 0x122   :  { %v581_v40 = vadd.f32 %v580_v35, %v546_v28  ;;  %714 = vmatpush.msrb.mxu2 %v688_v3  ;;  %v867_v3 = vld [vmem:[%s2897_s5 + $0x68] sm:$0xff] }
 0x124   :  { %v597_v37 = vmax.f32 %v581_v40, 0.0  ;;  %715 = vmatpush.msrb.mxu2 %v687_v56  ;;  %v897_v56 = vld [vmem:[%s2897_s5 + $0x158] sm:$0xff] }
 0x126   :  { %716 = vmatpush.msrb.mxu2 %v686_v4  ;;  %v866_v4 = vld [vmem:[%s2897_s5 + $0x60] sm:$0xff] }
 0x127   :  { %v548_v21 = vpop.f32.mrf.mxu0  ;;  %1429 = vmatmul.msk.f32.gmra.mxu2 %vm223_vm0, %v2298_v17 }
 0x128   :  { %v549_v49 = vadd.f32 %v548_v21, %v514_v44  ;;  %717 = vmatpush.msrb.mxu2 %v685_v53  ;;  %v679_v21 = vld [vmem:[%s2896_s4 + $0x8] sm:$0xff]  ;;  %v896_v53 = vld [vmem:[%s2897_s5 + $0x150] sm:$0xff] }
 0x12a   :  { %v584_v27 = vadd.f32 %v583_v50, %v549_v49  ;;  %718 = vmatpush.msrb.mxu2 %v684_v54  ;;  %v885_v54 = vld [vmem:[%s2897_s5 + $0xf8] sm:$0xff] }
 0x12b   :  { %939 = vmatpush.msrb.mxu1 %v885_v54 }
 0x12c   :  { %v599_v57 = vmax.f32 %v584_v27, 0.0  ;;  %719 = vmatpush.msrb.mxu2 %v683_v5  ;;  %v884_v5 = vld [vmem:[%s2897_s5 + $0xf0] sm:$0xff] }
 0x12d   :  { %940 = vmatpush.msrb.mxu1 %v884_v5 }
 0x12e   :  { %720 = vmatpush.msrb.mxu2 %v682_v11  ;;  %v865_v11 = vld [vmem:[%s2897_s5 + $0x58] sm:$0xff] }
 0x12f   :  { %v551_v63 = vpop.f32.mrf.mxu0  ;;  %1430 = vmatmul.msk.f32.gmra.mxu2 %vm223_vm0, %v607_v7 }
 0x130   :  { %v552_v46 = vadd.f32 %v551_v63, %v517_v13  ;;  %721 = vmatpush.msrb.mxu2 %v681_v12  ;;  %v895_v12 = vld [vmem:[%s2897_s5 + $0x148] sm:$0xff] }
 0x132   :  { %v587_v15 = vadd.f32 %v586_v23, %v552_v46  ;;  %722 = vmatpush.msrb.mxu2 %v680_v19  ;;  %v869_v46 = vld [vmem:[%s2897_s5 + $0x78] sm:$0xff]  ;;  %v864_v19 = vld [vmem:[%s2897_s5 + $0x50] sm:$0xff] }
 0x133   :  { %913 = vmatpush.msra.mxu0 %v869_v46  ;;  %v857_v46 = vld [vmem:[%s2897_s5 + $0x18] sm:$0xff] }
 0x134   :  { %v601_v8 = vmax.f32 %v587_v15, 0.0  ;;  %723 = vmatpush.msrb.mxu2 %v679_v21  ;;  %v894_v21 = vld [vmem:[%s2897_s5 + $0x140] sm:$0xff] }
 0x135   :  { %914 = vmatpush.msra.mxu0 %v868_v14 }
 0x137   :  { %v554_v25 = vpop.f32.mrf.mxu0  ;;  %915 = vmatpush.msra.mxu0 %v867_v3 }
 0x138   :  { %v555_v2 = vadd.f32 %v554_v25, %v520_v45 }
 0x139   :  { %916 = vmatpush.msra.mxu0 %v866_v4 }
 0x13a   :  { %v590_v39 = vadd.f32 %v589_v47, %v555_v2 }
 0x13b   :  { %917 = vmatpush.msra.mxu0 %v865_v11 }
 0x13c   :  { %v603_v52 = vmax.f32 %v590_v39, 0.0 }
 0x13d   :  { %918 = vmatpush.msra.mxu0 %v864_v19  ;;  %v1041_v19 = vld [vmem:[%s2899_s8 + $0x78] sm:$0xff] }
 0x13e   :  { %659 = vmatpush.msrb.mxu3 %v603_v52 }
 0x140   :  { %660 = vmatpush.msrb.mxu3 %v601_v8 }
 0x142   :  { %661 = vmatpush.msrb.mxu3 %v599_v57 }
 0x144   :  { %662 = vmatpush.msrb.mxu3 %v597_v37 }
 0x146   :  { %663 = vmatpush.msrb.mxu3 %v595_v0 }
 0x148   :  { %664 = vmatpush.msrb.mxu3 %v593_v1 }
 0x149   :  { %1431 = vmatmul.msk.f32.vlgmr.msrb.gmra.mxu3 %vm223_vm0, %v2278_v38  ;;  %v678_v38 = vld [vmem:[%s2896_s4] sm:$0xff]  ;;  %s1492_s4 = smov 88  }
 0x14a   :  { %752 = vmatpush.msra.mxu3 %v695_v61  ;;  %724 = vmatpush.msrb.mxu2 %v678_v38  ;;  %v898_v61 = vld [vmem:[%s2897_s5 + $0x160] sm:$0xff]  ;;  %v883_v38 = vld [vmem:[%s2897_s5 + $0xe8] sm:$0xff] }
 0x14b   :  { %941 = vmatpush.msrb.mxu1 %v883_v38 }
 0x14c   :  { %753 = vmatpush.msra.mxu3 %v694_v22  ;;  %968 = vmatpush.msra.mxu2 %v898_v61  ;;  %v863_v22 = vld [vmem:[%s2897_s5 + $0x48] sm:$0xff] }
 0x14d   :  { %919 = vmatpush.msra.mxu0 %v863_v22  ;;  %v1038_v22 = vld [vmem:[%s2899_s8 + $0x60] sm:$0xff] }
 0x14e   :  { %969 = vmatpush.msra.mxu2 %v897_v56 }
 0x150   :  { %970 = vmatpush.msra.mxu2 %v896_v53 }
 0x151   :  { %1432 = vmatmul.msk.f32.gmra.mxu3 %vm223_vm0, %v2287_v34 }
 0x152   :  { %971 = vmatpush.msra.mxu2 %v895_v12 }
 0x154   :  { %972 = vmatpush.msra.mxu2 %v894_v21  ;;  %v1040_v21 = vld [vmem:[%s2899_s8 + $0x70] sm:$0xff] }
 0x159   :  { %1433 = vmatmul.msk.f32.gmra.mxu3 %vm223_vm0, %v2298_v17 }
 0x161   :  { %1434 = vmatmul.msk.f32.gmra.mxu3 %vm223_vm0, %v607_v7 }
 0x19a   :  { %v637_v59 = vpop.f32.mrf.mxu2 }
 0x19b   :  { %725 = vmatmul.f32.vlgmr.msrb.gmra.mxu2 %v637_v59  ;;  %v893_v59 = vld [vmem:[%s2897_s5 + $0x138] sm:$0xff] }
 0x19c   :  { %973 = vmatpush.msra.mxu2 %v893_v59 }
 0x1a2   :  { %v640_v23 = vpop.f32.mrf.mxu2 }
 0x1a3   :  { %728 = vmatmul.f32.gmra.mxu2 %v640_v23  ;;  %v882_v23 = vld [vmem:[%s2897_s5 + $0xe0] sm:$0xff] }
 0x1a4   :  { %942 = vmatpush.msrb.mxu1 %v882_v23  ;;  %v1037_v23 = vld [vmem:[%s2899_s8 + $0x58] sm:$0xff] }
 0x1aa   :  { %v643_v24 = vpop.f32.mrf.mxu2 }
 0x1ab   :  { %731 = vmatmul.f32.gmra.mxu2 %v643_v24  ;;  %v862_v24 = vld [vmem:[%s2897_s5 + $0x40] sm:$0xff] }
 0x1ac   :  { %920 = vmatpush.msra.mxu0 %v862_v24  ;;  %v1489_v24 = vld [vmem:[%s2898_s6] ss:$0 sm:$0xff] }
 0x1b2   :  { %v646_v32 = vpop.f32.mrf.mxu2 }
 0x1b3   :  { %734 = vmatmul.f32.gmra.mxu2 %v646_v32  ;;  %v892_v32 = vld [vmem:[%s2897_s5 + $0x130] sm:$0xff] }
 0x1b4   :  { %974 = vmatpush.msra.mxu2 %v892_v32 }
 0x1cc   :  { %v666_v33 = vpop.f32.mrf.mxu3 }
 0x1cd   :  { %1435 = vmatmul.msk.f32.vlgmr.msra.gmra.mxu3 %vm696_vm1, %v666_v33  ;;  %v881_v33 = vld [vmem:[%s2897_s5 + $0xd8] sm:$0xff] }
 0x1ce   :  { %943 = vmatpush.msrb.mxu1 %v881_v33  ;;  %v1036_v33 = vld [vmem:[%s2899_s8 + $0x50] sm:$0xff] }
 0x1d4   :  { %v669_v34 = vpop.f32.mrf.mxu3 }
 0x1d5   :  { %1436 = vmatmul.msk.f32.gmra.mxu3 %vm696_vm1, %v669_v34  ;;  %v861_v34 = vld [vmem:[%s2897_s5 + $0x38] sm:$0xff] }
 0x1d6   :  { %921 = vmatpush.msra.mxu0 %v861_v34 }
 0x1dc   :  { %v672_v35 = vpop.f32.mrf.mxu3 }
 0x1dd   :  { %1437 = vmatmul.msk.f32.gmra.mxu3 %vm696_vm1, %v672_v35  ;;  %v891_v35 = vld [vmem:[%s2897_s5 + $0x128] sm:$0xff] }
 0x1de   :  { %975 = vmatpush.msra.mxu2 %v891_v35  ;;  %v1035_v35 = vld [vmem:[%s2899_s8 + $0x48] sm:$0xff] }
 0x1e4   :  { %v675_v63 = vpop.f32.mrf.mxu3 }
 0x1e5   :  { %1438 = vmatmul.msk.f32.gmra.mxu3 %vm696_vm1, %v675_v63  ;;  %v880_v63 = vld [vmem:[%s2897_s5 + $0xd0] sm:$0xff] }
 0x1e6   :  { %944 = vmatpush.msrb.mxu1 %v880_v63 }
 0x21e   :  { %v726_v6 = vpop.f32.mrf.mxu2 }
 0x226   :  { %v729_v20 = vpop.f32.mrf.mxu2 }
 0x22e   :  { %v732_v44 = vpop.f32.mrf.mxu2 }
 0x236   :  { %v735_v52 = vpop.f32.mrf.mxu2 }
 0x250   :  { %v755_v36 = vpop.f32.mrf.mxu3 }
 0x251   :  { %v2376_v41 = vadd.f32 %v755_v36, %v726_v6  ;;  %v860_v6 = vld [vmem:[%s2897_s5 + $0x30] sm:$0xff]  ;;  %v890_v36 = vld [vmem:[%s2897_s5 + $0x120] sm:$0xff] }
 0x252   :  { %922 = vmatpush.msra.mxu0 %v860_v6  ;;  %976 = vmatpush.msra.mxu2 %v890_v36 }
 0x253   :  { %v806_v9 = vrot.slane %v2376_v41, 3  ;;  %v823_v10 = vrot.slane %v2376_v41, 4  ;;  %v772_v49 = vrot.slane %v2376_v41, 1  ;;  %v789_v55 = vrot.slane %v2376_v41, 2 }
 0x258   :  { %v758_v42 = vpop.f32.mrf.mxu3 }
 0x259   :  { %v2378_v30 = vadd.f32 %v758_v42, %v729_v20  ;;  %v879_v20 = vld [vmem:[%s2897_s5 + $0xc8] sm:$0xff] }
 0x25a   :  { %v859_v42 = vld [vmem:[%s2897_s5 + $0x28] sm:$0xff]  ;;  %945 = vmatpush.msrb.mxu1 %v879_v20 }
 0x25b   :  { %v807_v13 = vrot.slane %v2378_v30, 3  ;;  %v824_v25 = vrot.slane %v2378_v30, 4  ;;  %v773_v47 = vrot.slane %v2378_v30, 1  ;;  %v790_v29 = vrot.slane %v2378_v30, 2  ;;  %923 = vmatpush.msra.mxu0 %v859_v42  ;;  %v1034_v42 = vld [vmem:[%s2899_s8 + $0x40] sm:$0xff] }
 0x25d   :  { %v808_v43 = vsel %vm805_vm2, %v806_v9, %v807_v13  ;;  %v825_v50 = vsel %vm822_vm3, %v823_v10, %v824_v25  ;;  %v774_v28 = vsel %vm771_vm4, %v772_v49, %v773_v47  ;;  %v791_v57 = vsel %vm788_vm5, %v789_v55, %v790_v29  ;;  %v889_v9 = vld [vmem:[%s2897_s5 + $0x118] sm:$0xff]  ;;  %v856_v10 = vld [vmem:[%s2897_s5 + $0x10] sm:$0xff]  ;;  %v875_v49 = vld [vmem:[%s2897_s5 + $0xa8] sm:$0xff] }
 0x25e   :  { %813 = vrot.lane.b32.xlu0 %v808_v43, %s1492_s4  ;;  %v858_v43 = vld [vmem:[%s2897_s5 + $0x20] sm:$0xff]  ;;  %977 = vmatpush.msra.mxu2 %v889_v9 }
 0x25f   :  { %924 = vmatpush.msra.mxu0 %v858_v43 }
 0x260   :  { %v761_v45 = vpop.f32.mrf.mxu3 }
 0x261   :  { %v2387_v17 = vadd.f32 %v761_v45, %v732_v44  ;;  %v888_v44 = vld [vmem:[%s2897_s5 + $0x110] sm:$0xff]  ;;  %v877_v45 = vld [vmem:[%s2897_s5 + $0xb8] sm:$0xff]  ;;  %925 = vmatpush.msra.mxu0 %v857_v46 }
 0x262   :  { %978 = vmatpush.msra.mxu2 %v888_v44  ;;  %v1033_v44 = vld [vmem:[%s2899_s8 + $0x38] sm:$0xff] }
 0x263   :  { %v809_v48 = vrot.slane %v2387_v17, 3  ;;  %v775_v2 = vrot.slane %v2387_v17, 1  ;;  %v826_v51 = vrot.slane %v2387_v17, 4  ;;  %v792_v60 = vrot.slane %v2387_v17, 2  ;;  %926 = vmatpush.msra.mxu0 %v856_v10 }
 0x265   :  { %v810_v16 = vsel %vm805_vm2, %v807_v13, %v809_v48  ;;  %v776_v15 = vsel %vm771_vm4, %v773_v47, %v775_v2  ;;  %v827_v8 = vsel %vm822_vm3, %v824_v25, %v826_v51  ;;  %v793_v7 = vsel %vm788_vm5, %v790_v29, %v792_v60  ;;  %v878_v13 = vld [vmem:[%s2897_s5 + $0xc0] sm:$0xff]  ;;  %v887_v25 = vld [vmem:[%s2897_s5 + $0x108] sm:$0xff]  ;;  %v876_v47 = vld [vmem:[%s2897_s5 + $0xb0] sm:$0xff] }
 0x266   :  { %830 = vrot.lane.b32.xlu0 %v825_v50, %s1493_s22  ;;  %815 = vrot.lane.b32.xlu2 %v810_v16, %s1492_s4  ;;  %v1484_v39 = vpack.i.bf16 %v776_v15, %v774_v28  ;;  %v874_v50 = vld [vmem:[%s2897_s5 + $0xa0] sm:$0xff]  ;;  %v873_v28 = vld [vmem:[%s2897_s5 + $0x98] sm:$0xff] }
 0x267   :  { %946 = vmatpush.msrb.mxu1 %v878_v13  ;;  %979 = vmatpush.msra.mxu2 %v887_v25  ;;  %v854_v16 = vld [vmem:[%s2897_s5] sm:$0xff]  ;;  %v872_v15 = vld [vmem:[%s2897_s5 + $0x90] sm:$0xff] }
 0x268   :  { %1485 = vrot.lane.b32.xlu1 %v1484_v39, %s1494_s23  ;;  %v764_v27 = vpop.f32.mrf.mxu3  ;;  %v871_v39 = vld [vmem:[%s2897_s5 + $0x88] sm:$0xff]  ;;  %v1032_v25 = vld [vmem:[%s2899_s8 + $0x30] sm:$0xff] }
 0x269   :  { %v765_v40 = vadd.f32 %v764_v27, %v735_v52  ;;  %947 = vmatpush.msrb.mxu1 %v877_v45 }
 0x26b   :  { %v828_v18 = vrot.slane %v765_v40, 4  ;;  %v777_v31 = vrot.slane %v765_v40, 1  ;;  %v811_v58 = vrot.slane %v765_v40, 3  ;;  %v794_v26 = vrot.slane %v765_v40, 2  ;;  %948 = vmatpush.msrb.mxu1 %v876_v47 }
 0x26d   :  { %v829_v37 = vsel %vm822_vm3, %v826_v51, %v828_v18  ;;  %v778_v62 = vsel %vm771_vm4, %v775_v2, %v777_v31  ;;  %v812_v0 = vsel %vm805_vm2, %v809_v48, %v811_v58  ;;  %v795_v1 = vsel %vm788_vm5, %v792_v60, %v794_v26  ;;  %v886_v48 = vld [vmem:[%s2897_s5 + $0x100] sm:$0xff]  ;;  %949 = vmatpush.msrb.mxu1 %v875_v49  ;;  %v855_v2 = vld [vmem:[%s2897_s5 + $0x8] sm:$0xff] }
 0x26e   :  { %832 = vrot.lane.b32.xlu2 %v827_v8, %s1493_s22  ;;  %798 = vrot.lane.b32.xlu0 %v793_v7, %s1495_s24  ;;  %v870_v51 = vld [vmem:[%s2897_s5 + $0x80] sm:$0xff] }
 0x26f   :  { %980 = vmatpush.msra.mxu2 %v886_v48  ;;  %927 = vmatpush.msra.mxu0 %v855_v2  ;;  %v1031_v48 = vld [vmem:[%s2899_s8 + $0x28] sm:$0xff]  ;;  %v1030_v2 = vld [vmem:[%s2899_s8 + $0x20] sm:$0xff] }
 0x270   :  { %796 = vrot.lane.b32.xlu1 %v791_v57, %s1495_s24  ;;  %950 = vmatpush.msrb.mxu1 %v874_v50 }
 0x271   :  { %928 = vmatpush.msra.mxu0 %v854_v16  ;;  %v994_v16 = vld [vmem:[%s2900_s7] sm:$0xff] }
 0x272   :  { %951 = vmatpush.msrb.mxu1 %v873_v28  ;;  %v1029_v28 = vld [vmem:[%s2899_s8 + $0x18] sm:$0xff] }
 0x273   :  { %1042 = vmatpush.msrb.mxu0 %v1041_v19 }
 0x274   :  { %952 = vmatpush.msrb.mxu1 %v872_v15  ;;  %v1028_v15 = vld [vmem:[%s2899_s8 + $0x10] sm:$0xff] }
 0x275   :  { %1043 = vmatpush.msrb.mxu0 %v1040_v21 }
 0x276   :  { %834 = vrot.lane.b32.xlu2 %v829_v37, %s1493_s22  ;;  %783 = vrot.lane.b32.xlu0 %v778_v62, %s1494_s23 }
 0x277   :  { %953 = vmatpush.msrb.mxu1 %v871_v39  ;;  %v1027_v39 = vld [vmem:[%s2899_s8 + $0x8] sm:$0xff] }
 0x278   :  { %817 = vrot.lane.b32.xlu1 %v812_v0, %s1492_s4 }
 0x279   :  { %954 = vmatpush.msrb.mxu1 %v870_v51  ;;  %v995_v51 = vld [vmem:[%s2900_s7 + $0x8] sm:$0xff] }
 0x280   :  { %800 = vrot.lane.b32.xlu1 %v795_v1, %s1495_s24 }
 0x2c0   :  { %v816_v27 = vpop.permute.xlu2 %815 }
 0x2c8   :  { %v833_v55 = vpop.permute.xlu2 %832 }
 0x2c9   :  { %v852_v31 = vsel %vm850_vm7, %v816_v27, %v833_v55  ;;  %v1133_v55 = vld [vmem:[%s2901_s9 + $0x118] sm:$0xff] }
 0x2d0   :  { %v814_v60 = vpop.permute.xlu0 %813 }
 0x2d8   :  { %v831_v52 = vpop.permute.xlu0 %830 }
 0x2d9   :  { %v851_v29 = vsel %vm850_vm7, %v814_v60, %v831_v52 }
 0x2da   :  { %1439 = vmatmul.msk.f32.vlgmr.msra.gmra.mxu2 %vm903_vm6, %v851_v29  ;;  %v1486_v40 = vpop.permute.xlu1 %1485  ;;  %v1137_v29 = vld [vmem:[%s2901_s9 + $0x138] sm:$0xff] }
 0x2db   :  { %v1487_v8 = vunpack.i.l.bf16 %v1486_v40  ;;  %v1488_v18 = vunpack.i.h.bf16 %v1486_v40  ;;  %v1136_v40 = vld [vmem:[%s2901_s9 + $0x130] sm:$0xff] }
 0x2dd   :  { %v840_v7 = vsel %vm839_vm8, %v2376_v41, %v1487_v8  ;;  %v841_v0 = vsel %vm839_vm8, %v2378_v30, %v1488_v18  ;;  %v835_v41 = vpop.permute.xlu2 %834 }
 0x2de   :  { %929 = vmatmul.f32.vlgmr.msra.gmra.mxu0 %v840_v7  ;;  %v1134_v7 = vld [vmem:[%s2901_s9 + $0x120] sm:$0xff] }
 0x2e0   :  { %v799_v57 = vpop.permute.xlu0 %798 }
 0x2e1   :  { %v844_v26 = vsel %vm696_vm1, %v1488_v18, %v799_v57  ;;  %v1132_v57 = vld [vmem:[%s2901_s9 + $0x110] sm:$0xff]  ;;  %v1131_v18 = vld [vmem:[%s2901_s9 + $0x108] sm:$0xff] }
 0x2e2   :  { %1440 = vmatmul.msk.f32.gmra.mxu2 %vm903_vm6, %v852_v31  ;;  %v797_v58 = vpop.permute.xlu1 %796  ;;  %v848_v3 = vsel %vm846_vm9, %v844_v26, %v816_v27  ;;  %v1130_v31 = vld [vmem:[%s2901_s9 + $0x100] sm:$0xff]  ;;  %v1112_v26 = vld [vmem:[%s2901_s9 + $0x70] sm:$0xff] }
 0x2e3   :  { %v843_v37 = vsel %vm696_vm1, %v1487_v8, %v797_v58  ;;  %v1135_v8 = vld [vmem:[%s2901_s9 + $0x128] sm:$0xff]  ;;  %v1129_v58 = vld [vmem:[%s2901_s9 + $0xf8] sm:$0xff] }
 0x2e4   :  { %v847_v62 = vsel %vm846_vm9, %v843_v37, %v814_v60  ;;  %v1026_v60 = vld [vmem:[%s2899_s8] sm:$0xff]  ;;  %v1128_v37 = vld [vmem:[%s2901_s9 + $0xf0] sm:$0xff]  ;;  %1169 = vmatpush.msrb.mxu2 %v1129_v58 }
 0x2e5   :  { %955 = vmatmul.f32.vlgmr.msrb.gmra.mxu1 %v847_v62  ;;  %v1127_v62 = vld [vmem:[%s2901_s9 + $0xe8] sm:$0xff] }
 0x2e6   :  { %932 = vmatmul.f32.gmra.mxu0 %v841_v0  ;;  %1170 = vmatpush.msrb.mxu2 %v1128_v37  ;;  %v1126_v0 = vld [vmem:[%s2901_s9 + $0xe0] sm:$0xff] }
 0x2e8   :  { %v784_v1 = vpop.permute.xlu0 %783  ;;  %1171 = vmatpush.msrb.mxu2 %v1127_v62 }
 0x2e9   :  { %v842_v56 = vsel %vm839_vm8, %v2387_v17, %v784_v1  ;;  %v1039_v17 = vld [vmem:[%s2899_s8 + $0x68] sm:$0xff] }
 0x2ea   :  { %v818_v14 = vpop.permute.xlu1 %817  ;;  %1044 = vmatpush.msrb.mxu0 %v1039_v17  ;;  %1172 = vmatpush.msrb.mxu2 %v1126_v0 }
 0x2eb   :  { %v853_v61 = vsel %vm850_vm7, %v818_v14, %v835_v41  ;;  %v1113_v41 = vld [vmem:[%s2901_s9 + $0x78] sm:$0xff] }
 0x2ec   :  { %1441 = vmatmul.msk.f32.gmra.mxu2 %vm903_vm6, %v853_v61  ;;  %1045 = vmatpush.msrb.mxu0 %v1038_v22  ;;  %v1124_v61 = vld [vmem:[%s2901_s9 + $0xd0] sm:$0xff]  ;;  %v1118_v22 = vld [vmem:[%s2901_s9 + $0xa0] sm:$0xff] }
 0x2ed   :  { %958 = vmatmul.f32.gmra.mxu1 %v848_v3  ;;  %v1123_v3 = vld [vmem:[%s2901_s9 + $0xc8] sm:$0xff] }
 0x2ee   :  { %935 = vmatmul.f32.gmra.mxu0 %v842_v56  ;;  %1146 = vmatpush.msra.mxu1 %v1113_v41 }
 0x2ef   :  { %1046 = vmatpush.msrb.mxu0 %v1037_v23 }
 0x2f0   :  { %1147 = vmatpush.msra.mxu1 %v1112_v26 }
 0x2f1   :  { %1047 = vmatpush.msrb.mxu0 %v1036_v33  ;;  %v1116_v33 = vld [vmem:[%s2901_s9 + $0x90] sm:$0xff] }
 0x2f2   :  { %v801_v4 = vpop.permute.xlu1 %800 }
 0x2f3   :  { %v845_v30 = vsel %vm696_vm1, %v784_v1, %v801_v4  ;;  %1048 = vmatpush.msrb.mxu0 %v1035_v35  ;;  %v1125_v1 = vld [vmem:[%s2901_s9 + $0xd8] sm:$0xff]  ;;  %v1122_v4 = vld [vmem:[%s2901_s9 + $0xc0] sm:$0xff] }
 0x2f4   :  { %v849_v53 = vsel %vm846_vm9, %v845_v30, %v818_v14  ;;  %v1111_v14 = vld [vmem:[%s2901_s9 + $0x68] sm:$0xff]  ;;  %1173 = vmatpush.msrb.mxu2 %v1125_v1  ;;  %v1121_v30 = vld [vmem:[%s2901_s9 + $0xb8] sm:$0xff]  ;;  %v1110_v35 = vld [vmem:[%s2901_s9 + $0x60] sm:$0xff] }
 0x2f5   :  { %961 = vmatmul.f32.gmra.mxu1 %v849_v53  ;;  %1049 = vmatpush.msrb.mxu0 %v1034_v42  ;;  %v1120_v53 = vld [vmem:[%s2901_s9 + $0xb0] sm:$0xff]  ;;  %v1106_v42 = vld [vmem:[%s2901_s9 + $0x40] sm:$0xff] }
 0x2f6   :  { %1148 = vmatpush.msra.mxu1 %v1111_v14  ;;  %1174 = vmatpush.msrb.mxu2 %v1124_v61  ;;  %v1221_v1 = vld [vmem:[%s2903_s11] sm:$0x3]  ;;  %v1448_v61 = vld [vmem:[%s2903_s11 + $0x2] sm:$0x3] }
 0x2f7   :  { %1050 = vmatpush.msrb.mxu0 %v1033_v44  ;;  %v1102_v44 = vld [vmem:[%s2901_s9 + $0x20] sm:$0xff] }
 0x2f8   :  { %1175 = vmatpush.msrb.mxu2 %v1123_v3  ;;  %1149 = vmatpush.msra.mxu1 %v1110_v35  ;;  %v1451_v3 = vld [vmem:[%s2903_s11 + $0x4] sm:$0x3]  ;;  %v1340_v35 = vld [vmem:[%s2904_s12 + $0x30] sm:$0xff] }
 0x2f9   :  { %1051 = vmatpush.msrb.mxu0 %v1032_v25  ;;  %v1099_v25 = vld [vmem:[%s2901_s9 + $0x8] sm:$0xff] }
 0x2fa   :  { %1176 = vmatpush.msrb.mxu2 %v1122_v4  ;;  %v1349_v4 = vld [vmem:[%s2904_s12 + $0x78] sm:$0xff] }
 0x2fb   :  { %1052 = vmatpush.msrb.mxu0 %v1031_v48 }
 0x2fc   :  { %1177 = vmatpush.msrb.mxu2 %v1121_v30  ;;  %v1348_v30 = vld [vmem:[%s2904_s12 + $0x70] sm:$0xff] }
 0x2fd   :  { %1053 = vmatpush.msrb.mxu0 %v1030_v2 }
 0x2fe   :  { %1178 = vmatpush.msrb.mxu2 %v1120_v53  ;;  %v1365_v53 = vld [vmem:[%s2904_s12 + $0xf8] sm:$0xff] }
 0x2ff   :  { %1054 = vmatpush.msrb.mxu0 %v1029_v28 }
 0x301   :  { %1055 = vmatpush.msrb.mxu0 %v1028_v15 }
 0x303   :  { %1056 = vmatpush.msrb.mxu0 %v1027_v39 }
 0x305   :  { %1057 = vmatpush.msrb.mxu0 %v1026_v60 }
 0x35b   :  { %v930_v54 = vpop.f32.mrf.mxu0 }
 0x35c   :  { %v931_v63 = vadd.f32 %v1489_v24, %v930_v54  ;;  %v1119_v54 = vld [vmem:[%s2901_s9 + $0xa8] sm:$0xff] }
 0x35d   :  { %v982_v5 = vpop.f32.mrf.mxu2  ;;  %1179 = vmatpush.msrb.mxu2 %v1119_v54  ;;  %v1347_v54 = vld [vmem:[%s2904_s12 + $0x68] sm:$0xff] }
 0x35f   :  { %1180 = vmatpush.msrb.mxu2 %v1118_v22  ;;  %v1360_v22 = vld [vmem:[%s2904_s12 + $0xd0] sm:$0xff] }
 0x362   :  { %v956_v11 = vpop.f32.mrf.mxu1 }
 0x363   :  { %v933_v12 = vpop.f32.mrf.mxu0  ;;  %v957_v9 = vadd.f32 %v956_v11, %v931_v63  ;;  %v1114_v63 = vld [vmem:[%s2901_s9 + $0x80] sm:$0xff] }
 0x364   :  { %v934_v34 = vadd.f32 %v1489_v24, %v933_v12 }
 0x365   :  { %v985_v59 = vpop.f32.mrf.mxu2  ;;  %v983_v47 = vadd.f32 %v982_v5, %v957_v9  ;;  %v1105_v9 = vld [vmem:[%s2901_s9 + $0x38] sm:$0xff] }
 0x367   :  { %v991_v50 = vmax.f32 %v983_v47, 0.0  ;;  %v1098_v47 = vld [vmem:[%s2901_s9] sm:$0xff] }
 0x36a   :  { %v959_v38 = vpop.f32.mrf.mxu1 }
 0x36b   :  { %v936_v32 = vpop.f32.mrf.mxu0  ;;  %v960_v6 = vadd.f32 %v959_v38, %v934_v34  ;;  %v1115_v34 = vld [vmem:[%s2901_s9 + $0x88] sm:$0xff] }
 0x36c   :  { %v937_v36 = vadd.f32 %v1489_v24, %v936_v32  ;;  %v1117_v32 = vld [vmem:[%s2901_s9 + $0x98] sm:$0xff] }
 0x36d   :  { %v986_v45 = vadd.f32 %v985_v59, %v960_v6  ;;  %1181 = vmatpush.msrb.mxu2 %v1117_v32  ;;  %v1109_v6 = vld [vmem:[%s2901_s9 + $0x58] sm:$0xff]  ;;  %v1358_v32 = vld [vmem:[%s2904_s12 + $0xc0] sm:$0xff] }
 0x36e   :  { %1150 = vmatpush.msra.mxu1 %v1109_v6  ;;  %v1339_v6 = vld [vmem:[%s2904_s12 + $0x28] sm:$0xff] }
 0x36f   :  { %v988_v43 = vpop.f32.mrf.mxu2  ;;  %v992_v49 = vmax.f32 %v986_v45, 0.0  ;;  %1182 = vmatpush.msrb.mxu2 %v1116_v33  ;;  %v1101_v45 = vld [vmem:[%s2901_s9 + $0x18] sm:$0xff] }
 0x370   :  { %v1341_v33 = vld [vmem:[%s2904_s12 + $0x38] sm:$0xff] }
 0x371   :  { %1183 = vmatpush.msrb.mxu2 %v1115_v34  ;;  %v1357_v34 = vld [vmem:[%s2904_s12 + $0xb8] sm:$0xff] }
 0x372   :  { %v962_v20 = vpop.f32.mrf.mxu1 }
 0x373   :  { %v963_v13 = vadd.f32 %v962_v20, %v937_v36  ;;  %1184 = vmatpush.msrb.mxu2 %v1114_v63  ;;  %v1108_v36 = vld [vmem:[%s2901_s9 + $0x50] sm:$0xff]  ;;  %v1107_v20 = vld [vmem:[%s2901_s9 + $0x48] sm:$0xff] }
 0x374   :  { %1151 = vmatpush.msra.mxu1 %v1108_v36  ;;  %v1356_v63 = vld [vmem:[%s2904_s12 + $0xb0] sm:$0xff]  ;;  %v1355_v36 = vld [vmem:[%s2904_s12 + $0xa8] sm:$0xff] }
 0x375   :  { %v989_v46 = vadd.f32 %v988_v43, %v963_v13  ;;  %v1104_v13 = vld [vmem:[%s2901_s9 + $0x30] sm:$0xff]  ;;  %v1103_v43 = vld [vmem:[%s2901_s9 + $0x28] sm:$0xff]  ;;  %1390 = vmatpush.msra.mxu2 %v1365_v53 }
 0x376   :  { %1152 = vmatpush.msra.mxu1 %v1107_v20  ;;  %v1338_v20 = vld [vmem:[%s2904_s12 + $0x20] sm:$0xff] }
 0x377   :  { %v993_v10 = vmax.f32 %v989_v46, 0.0  ;;  %v1100_v46 = vld [vmem:[%s2901_s9 + $0x10] sm:$0xff] }
 0x378   :  { %1153 = vmatpush.msra.mxu1 %v1106_v42  ;;  %v1337_v42 = vld [vmem:[%s2904_s12 + $0x18] sm:$0xff] }
 0x379   :  { %1016 = vmatpush.msrb.mxu3 %v993_v10 }
 0x37a   :  { %1154 = vmatpush.msra.mxu1 %v1105_v9 }
 0x37b   :  { %1017 = vmatpush.msrb.mxu3 %v992_v49 }
 0x37c   :  { %1155 = vmatpush.msra.mxu1 %v1104_v13 }
 0x37d   :  { %1018 = vmatpush.msrb.mxu3 %v991_v50 }
 0x37e   :  { %1442 = vmatmul.msk.f32.vlgmr.msrb.gmra.mxu3 %vm996_vm10, %v994_v16  ;;  %1156 = vmatpush.msra.mxu1 %v1103_v43  ;;  %v1336_v43 = vld [vmem:[%s2904_s12 + $0x10] sm:$0xff] }
 0x37f   :  { %1200 = vmatpush.msra.mxu3 %v1137_v29 }
 0x380   :  { %1157 = vmatpush.msra.mxu1 %v1102_v44  ;;  %v1335_v44 = vld [vmem:[%s2904_s12 + $0x8] sm:$0xff] }
 0x381   :  { %1201 = vmatpush.msra.mxu3 %v1136_v40 }
 0x382   :  { %1158 = vmatpush.msra.mxu1 %v1101_v45 }
 0x383   :  { %1202 = vmatpush.msra.mxu3 %v1135_v8 }
 0x384   :  { %1159 = vmatpush.msra.mxu1 %v1100_v46  ;;  %v1334_v46 = vld [vmem:[%s2904_s12] sm:$0xff] }
 0x385   :  { %1203 = vmatpush.msra.mxu3 %v1134_v7 }
 0x386   :  { %1443 = vmatmul.msk.f32.gmra.mxu3 %vm996_vm10, %v995_v51  ;;  %1160 = vmatpush.msra.mxu1 %v1099_v25  ;;  %v1354_v25 = vld [vmem:[%s2904_s12 + $0xa0] sm:$0xff] }
 0x387   :  { %1204 = vmatpush.msra.mxu3 %v1133_v55 }
 0x388   :  { %1161 = vmatpush.msra.mxu1 %v1098_v47  ;;  %v1353_v47 = vld [vmem:[%s2904_s12 + $0x98] sm:$0xff] }
 0x389   :  { %1205 = vmatpush.msra.mxu3 %v1132_v57 }
 0x38b   :  { %1206 = vmatpush.msra.mxu3 %v1131_v18 }
 0x38d   :  { %1207 = vmatpush.msra.mxu3 %v1130_v31 }
 0x401   :  { %v1020_v27 = vpop.f32.mrf.mxu3 }
 0x402   :  { %1058 = vmatmul.f32.vlgmr.msrb.gmra.mxu0 %v1020_v27  ;;  %v1490_v27 = vld [vmem:[%s2902_s10] ss:$0 sm:$0xff] }
 0x409   :  { %v1023_v52 = vpop.f32.mrf.mxu3 }
 0x40a   :  { %1061 = vmatmul.f32.gmra.mxu0 %v1023_v52 }
 0x47f   :  { %v2673_v56 = vpop.f32.mrf.mxu0 }
 0x480   :  { %v1090_v5 = vrot.slane %v2673_v56, 4  ;;  %v1081_v12 = vrot.slane %v2673_v56, 3  ;;  %v1067_v17 = vrot.slane %v2673_v56, 1  ;;  %v1076_v48 = vrot.slane %v2673_v56, 2 }
 0x487   :  { %v2688_v11 = vpop.f32.mrf.mxu0 }
 0x488   :  { %v1091_v19 = vrot.slane %v2688_v11, 4  ;;  %v1082_v21 = vrot.slane %v2688_v11, 3  ;;  %v1068_v38 = vrot.slane %v2688_v11, 1  ;;  %v1077_v10 = vrot.slane %v2688_v11, 2 }
 0x48a   :  { %1086 = vrot.lane.b32.xlu1 %v1082_v21, %s1496_s19  ;;  %v1083_v59 = vsel %vm805_vm2, %v1081_v12, %v1082_v21  ;;  %v1069_v23 = vsel %vm771_vm4, %v1067_v17, %v1068_v38  ;;  %v1092_v24 = vsel %vm822_vm3, %v1090_v5, %v1091_v19  ;;  %v1078_v2 = vsel %vm788_vm5, %v1076_v48, %v1077_v10  ;;  %v1364_v5 = vld [vmem:[%s2904_s12 + $0xf0] sm:$0xff]  ;;  %v1346_v12 = vld [vmem:[%s2904_s12 + $0x60] sm:$0xff]  ;;  %v1345_v21 = vld [vmem:[%s2904_s12 + $0x58] sm:$0xff] }
 0x48b   :  { %1084 = vrot.lane.b32.xlu2 %v1083_v59, %s1496_s19  ;;  %1070 = vrot.lane.b32.xlu0 %v1069_v23, %s1496_s19  ;;  %v1361_v17 = vld [vmem:[%s2904_s12 + $0xd8] sm:$0xff]  ;;  %v1343_v59 = vld [vmem:[%s2904_s12 + $0x48] sm:$0xff] }
 0x48c   :  { %1444 = vmatmul.msk.f32.vlgmr.msra.gmra.mxu3 %vm1093_vm11, %v1092_v24  ;;  %1391 = vmatpush.msra.mxu2 %v1364_v5  ;;  %v1359_v23 = vld [vmem:[%s2904_s12 + $0xc8] sm:$0xff]  ;;  %v1342_v24 = vld [vmem:[%s2904_s12 + $0x40] sm:$0xff] }
 0x48d   :  { %v1351_v48 = vld [vmem:[%s2904_s12 + $0x88] sm:$0xff] }
 0x493   :  { %1072 = vrot.lane.b32.xlu2 %v1068_v38, %s1496_s19  ;;  %v1344_v38 = vld [vmem:[%s2904_s12 + $0x50] sm:$0xff] }
 0x494   :  { %1445 = vmatmul.msk.f32.gmra.mxu3 %vm1093_vm11, %v1091_v19  ;;  %v1362_v19 = vld [vmem:[%s2904_s12 + $0xe0] sm:$0xff] }
 0x4e5   :  { %v1085_v49 = vpop.permute.xlu2 %1084 }
 0x4e6   :  { %v1096_v50 = vsel %vm1093_vm11, %v1078_v2, %v1085_v49  ;;  %v1350_v49 = vld [vmem:[%s2904_s12 + $0x80] sm:$0xff] }
 0x4e7   :  { %1185 = vmatmul.f32.vlgmr.msrb.gmra.mxu2 %v1096_v50 }
 0x4ed   :  { %v1073_v51 = vpop.permute.xlu2 %1072 }
 0x4ee   :  { %v1095_v60 = vsel %vm1093_vm11, %v2688_v11, %v1073_v51  ;;  %v1363_v11 = vld [vmem:[%s2904_s12 + $0xe8] sm:$0xff] }
 0x4ef   :  { %1392 = vmatpush.msra.mxu2 %v1363_v11 }
 0x4f1   :  { %1393 = vmatpush.msra.mxu2 %v1362_v19 }
 0x4f3   :  { %1394 = vmatpush.msra.mxu2 %v1361_v17 }
 0x4f5   :  { %1395 = vmatpush.msra.mxu2 %v1360_v22 }
 0x4f7   :  { %1396 = vmatpush.msra.mxu2 %v1359_v23 }
 0x4f9   :  { %1397 = vmatpush.msra.mxu2 %v1358_v32 }
 0x4fb   :  { %1398 = vmatpush.msra.mxu2 %v1357_v34 }
 0x4fc   :  { %v1087_v16 = vpop.permute.xlu1 %1086 }
 0x4fd   :  { %v1071_v28 = vpop.permute.xlu0 %1070  ;;  %v1097_v15 = vsel %vm1093_vm11, %v1077_v10, %v1087_v16  ;;  %1399 = vmatpush.msra.mxu2 %v1356_v63  ;;  %v1352_v10 = vld [vmem:[%s2904_s12 + $0x90] sm:$0xff] }
 0x4fe   :  { %v1094_v39 = vsel %vm1093_vm11, %v2673_v56, %v1071_v28  ;;  %1188 = vmatmul.f32.gmra.mxu2 %v1097_v15  ;;  %v1454_v56 = vld [vmem:[%s2903_s11 + $0x6] sm:$0x3] }
 0x4ff   :  { %1162 = vmatmul.f32.vlgmr.msra.gmra.mxu1 %v1094_v39  ;;  %1400 = vmatpush.msra.mxu2 %v1355_v36  ;;  %v1491_v39 = vld [vmem:[%s2905_s13] ss:$0 sm:$0xff] }
 0x501   :  { %1401 = vmatpush.msra.mxu2 %v1354_v25 }
 0x503   :  { %1402 = vmatpush.msra.mxu2 %v1353_v47 }
 0x505   :  { %1403 = vmatpush.msra.mxu2 %v1352_v10 }
 0x507   :  { %1165 = vmatmul.f32.gmra.mxu1 %v1095_v60  ;;  %1404 = vmatpush.msra.mxu2 %v1351_v48 }
 0x509   :  { %1405 = vmatpush.msra.mxu2 %v1350_v49 }
 0x50f   :  { %v1209_v29 = vpop.f32.mrf.mxu3 }
 0x517   :  { %v1212_v37 = vpop.f32.mrf.mxu3 }
 0x56a   :  { %v1186_v40 = vpop.f32.mrf.mxu2 }
 0x57c   :  { %v1163_v52 = vpop.f32.mrf.mxu1 }
 0x57d   :  { %v1164_v8 = vadd.f32 %v1490_v27, %v1163_v52 }
 0x57f   :  { %v1187_v7 = vadd.f32 %v1186_v40, %v1164_v8 }
 0x581   :  { %v1189_v18 = vpop.f32.mrf.mxu2  ;;  %v1210_v31 = vadd.f32 %v1209_v29, %v1187_v7 }
 0x583   :  { %v1217_v41 = vmul.f32 0.01, %v1210_v31  ;;  %vm1215_vm13 = vcmp.gt.f32.partialorder %v1210_v31, 0.0 }
 0x584   :  { %v1166_v55 = vpop.f32.mrf.mxu1 }
 0x585   :  { %v1167_v57 = vadd.f32 %v1490_v27, %v1166_v55  ;;  %v1219_v14 = vsel %vm1215_vm13, %v1210_v31, %v1217_v41 }
 0x587   :  { %v1190_v58 = vadd.f32 %v1189_v18, %v1167_v57 }
 0x589   :  { %v1213_v62 = vadd.f32 %v1212_v37, %v1190_v58 }
 0x58b   :  { %v1218_v0 = vmul.f32 0.01, %v1213_v62  ;;  %vm1216_vm12 = vcmp.gt.f32.partialorder %v1213_v62, 0.0 }
 0x58d   :  { %v1220_v26 = vsel %vm1216_vm12, %v1213_v62, %v1218_v0 }
 0x58e   :  { %1446 = vmatpush.msk.msra.mxu0 %vm822_vm3, %v1220_v26  ;;  %1449 = vmatpush.msk.msrb.mxu1 %vm822_vm3, %v1220_v26 }
 0x58f   :  { %1452 = vmatpush.msk.msrb.mxu3 %vm822_vm3, %v1220_v26 }
 0x590   :  { %1244 = vmatpush.msra.mxu0 %v1219_v14  ;;  %1269 = vmatpush.msrb.mxu1 %v1219_v14 }
 0x591   :  { %1294 = vmatpush.msrb.mxu3 %v1219_v14  ;;  %1447 = vmatmul.msk.f32.vlgmr.msra.gmra.mxu0 %vm1222_vm14, %v1221_v1 }
 0x592   :  { %1450 = vmatmul.msk.f32.vlgmr.msrb.gmra.mxu1 %vm1222_vm14, %v1448_v61  ;;  %1455 = vmatpush.msk.msrb.mxu0 %vm822_vm3, %v1220_v26 }
 0x593   :  { %1453 = vmatmul.msk.f32.vlgmr.msrb.gmra.mxu3 %vm1222_vm14, %v1451_v3  ;;  %1370 = vmatpush.msra.mxu1 %v1349_v4 }
 0x594   :  { %1319 = vmatpush.msrb.mxu0 %v1219_v14 }
 0x595   :  { %1371 = vmatpush.msra.mxu1 %v1348_v30 }
 0x597   :  { %1372 = vmatpush.msra.mxu1 %v1347_v54 }
 0x599   :  { %1456 = vmatmul.msk.f32.vlgmr.msrb.gmra.mxu0 %vm1222_vm14, %v1454_v56  ;;  %1373 = vmatpush.msra.mxu1 %v1346_v12 }
 0x59b   :  { %1374 = vmatpush.msra.mxu1 %v1345_v21 }
 0x59d   :  { %1375 = vmatpush.msra.mxu1 %v1344_v38 }
 0x59f   :  { %1376 = vmatpush.msra.mxu1 %v1343_v59 }
 0x5a1   :  { %1377 = vmatpush.msra.mxu1 %v1342_v24 }
 0x5a3   :  { %1378 = vmatpush.msra.mxu1 %v1341_v33 }
 0x5a5   :  { %1379 = vmatpush.msra.mxu1 %v1340_v35 }
 0x5a7   :  { %1380 = vmatpush.msra.mxu1 %v1339_v6 }
 0x5a9   :  { %1381 = vmatpush.msra.mxu1 %v1338_v20 }
 0x5ab   :  { %1382 = vmatpush.msra.mxu1 %v1337_v42 }
 0x5ad   :  { %1383 = vmatpush.msra.mxu1 %v1336_v43 }
 0x5af   :  { %1384 = vmatpush.msra.mxu1 %v1335_v44 }
 0x5b1   :  { %1385 = vmatpush.msra.mxu1 %v1334_v46 }
 0x60e   :  { %v1246_v9 = vpop.f32.mrf.mxu0 }
 0x60f   :  { %v1271_v13 = vpop.f32.mrf.mxu1 }
 0x610   :  { %1325 = vrot.lane.b32.xlu1 %v1271_v13, %s1496_s19 }
 0x616   :  { %v1321_v45 = vpop.f32.mrf.mxu0  ;;  %v1296_v16 = vpop.f32.mrf.mxu3 }
 0x617   :  { %1329 = vrot.lane.b32.xlu0 %v1321_v45, %s1496_s19 }
 0x682   :  { %v1326_v2 = vpop.permute.xlu1 %1325 }
 0x683   :  { %v1332_v50 = vsel %vm1093_vm11, %v1246_v9, %v1326_v2 }
 0x684   :  { %1386 = vmatmul.f32.vlgmr.msra.gmra.mxu1 %v1332_v50 }
 0x689   :  { %v1330_v28 = vpop.permute.xlu0 %1329 }
 0x68a   :  { %v1333_v15 = vsel %vm1093_vm11, %v1296_v16, %v1330_v28 }
 0x68b   :  { %1406 = vmatmul.f32.vlgmr.msra.gmra.mxu2 %v1333_v15 }
 0x701   :  { %v1387_v51 = vpop.f32.mrf.mxu1 }
 0x702   :  { %v1388_v60 = vadd.f32 %v1491_v39, %v1387_v51 }
 0x70e   :  { %v1407_v27 = vpop.f32.mrf.mxu2 }
 0x70f   :  { %v1408_v52 = vadd.f32 %v1407_v27, %v1388_v60 }
 0x711   :  { %1410 = vst [vmem:[%s2906_s14] sm:$0x3] %v1408_v52 }

</bundles_post_ra>
